<compile_context>
chip_gen: v5e
topology: v5e:2x2
jax: 0.10.0
libtpu: 0.0.40
codegen_flags: <defaults>
</compile_context>

<pallas_src>
import functools
import math

import numpy as np
import jax
import jax.numpy as jnp
from jax import lax
from jax.experimental import pallas as pl
from jax.experimental.pallas import tpu as pltpu

LRELU_SLOPE = 0.01     # nn.LeakyReLU default
EPS_BN = 1e-5
EPS_LN = 1e-5

# Explicit VMEM budget: floor at the common 32 MiB scoped default, cap well under
# v7x's 64 MiB physical VMEM so the same kernels stay portable across v5e/v6e/v7x.
_VMEM_FLOOR = 32 * 1024 * 1024
_VMEM_CAP = 48 * 1024 * 1024


def _lrelu(x):
    return jnp.where(x >= 0, x, LRELU_SLOPE * x)


def _round_up(x, m):
    return ((x + m - 1) // m) * m


def _vmem_limit(est_bytes):
    return int(min(max(est_bytes, _VMEM_FLOOR), _VMEM_CAP))


# --------------------------- conv (im2col) matmul ---------------------------

def matmul_bias_kernel(col_ref, w_ref, b_ref, o_ref, *, activate):
    # One M-tile of: out = col @ w + b (optionally fused LeakyReLU).
    # col tile [tm, K] bf16, w [K, Np] bf16 (Np lane-dense 128-padded), b [1, Np] f32.
    acc = jnp.dot(col_ref[...], w_ref[...], preferred_element_type=jnp.float32)
    y = acc + b_ref[...]
    if activate:
        y = _lrelu(y)
    o_ref[...] = y.astype(o_ref.dtype)


def matmul_bias_pallas(col, wmat, bias, *, activate, out_dtype=jnp.float32,
                       tile_m=512, compute_dtype=jnp.bfloat16):
    # Tiled (M,K)@(K,N)+b with a pipelined grid over M; K whole per block,
    # N zero-padded to a lane-dense 128 multiple (unmasked stores, full MXU lanes).
    M, K = col.shape
    N = wmat.shape[1]
    Np = _round_up(N, 128)
    tm = max(16, min(tile_m, _round_up(M, 16)))     # multiple of 16 (bf16 packing)
    Mp = _round_up(M, tm)

    col = col.astype(compute_dtype)
    wmat = wmat.astype(compute_dtype)
    bias = bias.astype(jnp.float32)
    if Mp != M:
        col = jnp.pad(col, ((0, Mp - M), (0, 0)))
    if Np != N:
        wmat = jnp.pad(wmat, ((0, 0), (0, Np - N)))
        bias = jnp.pad(bias, ((0, 0), (0, Np - N)))

    out_bytes = jnp.dtype(out_dtype).itemsize
    est = (2 * (2 * tm * K)            # double-buffered col tiles (bf16)
           + 2 * K * Np + 4 * Np       # weights (bf16) + bias (f32)
           + 2 * (tm * Np * out_bytes) # double-buffered output tiles
           + (1 << 20))                # headroom
    out = pl.pallas_call(
        functools.partial(matmul_bias_kernel, activate=activate),
        out_shape=jax.ShapeDtypeStruct((Mp, Np), out_dtype),
        grid=(Mp // tm,),
        in_specs=[pl.BlockSpec((tm, K), lambda i: (i, 0)),
                  pl.BlockSpec((K, Np), lambda i: (0, 0)),
                  pl.BlockSpec((1, Np), lambda i: (0, 0))],
        out_specs=pl.BlockSpec((tm, Np), lambda i: (i, 0)),
        compiler_params=pltpu.CompilerParams(
            dimension_semantics=("parallel",),       # M tiles independent -> megacore
            vmem_limit_bytes=_vmem_limit(est)),
    )(col, wmat, bias)
    return out[:M, :N]


def im2col_3d_cl(x_cl, ksize, stride, pad):
    # Channels-last im2col: [B, D, H, W, C] -> [B*Do*Ho*Wo, ksize^3*C]
    B, D, H, W, C = x_cl.shape
    xp = jnp.pad(x_cl, ((0, 0), (pad, pad), (pad, pad), (pad, pad), (0, 0)))
    Do = (D + 2 * pad - ksize) // stride + 1
    Ho = (H + 2 * pad - ksize) // stride + 1
    Wo = (W + 2 * pad - ksize) // stride + 1
    patches = []
    for kd in range(ksize):
        for kh in range(ksize):
            for kw in range(ksize):
                patches.append(xp[:, kd:kd + stride * Do:stride,
                                     kh:kh + stride * Ho:stride,
                                     kw:kw + stride * Wo:stride, :])
    col = jnp.stack(patches, axis=4)                 # [B, Do, Ho, Wo, k^3, C]
    return col.reshape(B * Do * Ho * Wo, ksize ** 3 * C), (Do, Ho, Wo)


def conv3d_cl(x_cl, weight, bias, *, stride, pad, activate,
              out_dtype=jnp.float32, tile_m=512):
    # 3-D conv on a channels-last volume via im2col + tiled Pallas matmul.
    # weight: PyTorch layout [Cout, Cin, k, k, k]; returns [B, Do, Ho, Wo, Cout].
    # TODO(synk): for large volumes replace the XLA-side im2col (27x HBM
    # amplification) with in-kernel 27-tap accumulation (grid over taps + VMEM acc).
    Cout, Cin, k = weight.shape[0], weight.shape[1], weight.shape[2]
    col, (Do, Ho, Wo) = im2col_3d_cl(x_cl, k, stride, pad)
    # col row-feature order is (kd, kh, kw, cin) -> match with a weight transpose
    wmat = jnp.transpose(weight, (2, 3, 4, 1, 0)).reshape(k ** 3 * Cin, Cout)
    out = matmul_bias_pallas(col, wmat, bias.reshape(1, Cout),
                             activate=activate, out_dtype=out_dtype, tile_m=tile_m)
    B = x_cl.shape[0]
    return out.reshape(B, Do, Ho, Wo, Cout)


# ------------------------------ fused MHA kernel ------------------------------

def mha_kernel(q_ref, img_ref, vpe_ref, cpe_ref,
               wk_lin_ref, bk_lin_ref, kg_ref, kb_ref,
               wv_lin_ref, bv_lin_ref, vg_ref, vb_ref,
               wq_ref, wk_ref, wv_ref, bq_ref, bk_ref, bv_ref,
               wo_ref, bo_ref, hmask_ref, bones_ref, o_ref, *, num_heads):
    # One batch element per grid step (grid=(B,), "parallel").
    #   q_ref [1, Nq, E] bf16, img_ref [1, 1, img_dim] f32, PEs f32, weights bf16.
    Nq = q_ref.shape[1]
    E = q_ref.shape[2]
    S = cpe_ref.shape[0]
    hd = E // num_heads
    HS = num_heads * S
    scale = 1.0 / math.sqrt(hd)
    bf = jnp.bfloat16

    def layer_norm(z, g, b):
        mu = jnp.mean(z, axis=-1, keepdims=True)
        var = jnp.mean((z - mu) ** 2, axis=-1, keepdims=True)
        return (z - mu) * lax.rsqrt(var + EPS_LN) * g + b

    # ---- fused k/v prologue: Linear + LayerNorm + condition PE (one img row) ----
    img_row = img_ref[0].astype(bf)                                   # [1, img_dim]
    kf = layer_norm(jnp.dot(img_row, wk_lin_ref[...],
                            preferred_element_type=jnp.float32) + bk_lin_ref[...],
                    kg_ref[...], kb_ref[...])                         # [1, E]
    vf = layer_norm(jnp.dot(img_row, wv_lin_ref[...],
                            preferred_element_type=jnp.float32) + bv_lin_ref[...],
                    vg_ref[...], vb_ref[...])                         # [1, E]
    k_tok = kf + cpe_ref[...]                                         # [S, E]
    v_tok = vf + cpe_ref[...]                                         # [S, E]

    # ---- q tokens + voxel positional encoding ----
    q_tok = q_ref[0].astype(jnp.float32) + vpe_ref[...]               # [Nq, E]

    # ---- in-projections: bf16 operands, f32 MXU accumulation ----
    qp = jnp.dot(q_tok.astype(bf), wq_ref[...],
                 preferred_element_type=jnp.float32) + bq_ref[...]    # [Nq, E]
    kp = jnp.dot(k_tok.astype(bf), wk_ref[...],
                 preferred_element_type=jnp.float32) + bk_ref[...]    # [S, E]
    vp = jnp.dot(v_tok.astype(bf), wv_ref[...],
                 preferred_element_type=jnp.float32) + bv_ref[...]    # [S, E]

    # ---- block-masked single-slab attention ----
    # head stacks: repeat along sublanes (broadcast + major-collapse reshape, no
    # lane-axis concats), isolate heads with the precomputed [HS, E] block mask.
    hm = hmask_ref[...]                                               # [HS, E] bf16
    k_stack = jnp.broadcast_to(kp.astype(bf)[None], (num_heads, S, E)).reshape(HS, E) * hm
    v_stack = jnp.broadcast_to(vp.astype(bf)[None], (num_heads, S, E)).reshape(HS, E) * hm

    # all-head scores in one MXU pass: s[n, h*S+s'] = <q_h[n], k_h[s']>
    s = lax.dot_general(qp.astype(bf), k_stack, (((1,), (1,)), ((), ())),
                        preferred_element_type=jnp.float32) * scale   # [Nq, HS]

    # segmented softmax: a single row-wide max is a valid shift for every head
    # segment (it cancels in each segment's normalization); assumes per-head score
    # spreads stay within exp() range (|delta| < ~80), true for these activations.
    m = jnp.max(s, axis=-1, keepdims=True)                            # [Nq, 1]
    p = jnp.exp(s - m).astype(bf)                                     # [Nq, HS]
    # per-head sums via ONE MXU pass against a block-diagonal ones matrix
    d = jnp.dot(p, bones_ref[...], preferred_element_type=jnp.float32)
    d = jnp.maximum(d, 1e-30)                                         # guard 1/0
    # approx EUP reciprocal: rows sum to 1 up to ~2^-12 relative error
    p_norm = (p.astype(jnp.float32) * pl.reciprocal(d, approx=True)).astype(bf)

    # block-masked PV matmul folds per-head context + head concatenation
    ctx = jnp.dot(p_norm, v_stack, preferred_element_type=jnp.float32)   # [Nq, E]

    out = jnp.dot(ctx.astype(bf), wo_ref[...],
                  preferred_element_type=jnp.float32) + bo_ref[...]
    o_ref[0] = out.astype(o_ref.dtype)


def mha_pallas(q_tok, img, voxel_pe, condition_pe, p, *, num_heads,
               out_dtype=jnp.bfloat16):
    # nn.Linear+LayerNorm (k/v) + PE adds + nn.MultiheadAttention(batch_first),
    # inference (no dropout), fused into one pallas_call gridded over batch.
    B, Nq, E = q_tok.shape
    S = condition_pe.shape[0]
    img_dim = img.shape[-1]
    HS = num_heads * S
    hd = E // num_heads
    bf = jnp.bfloat16
    f32 = jnp.float32

    # in_proj split (torch layout: rows [q; k; v], each [E, E]; x @ W^T)
    Wq, Wk, Wv = p['attn_in_w'][:E], p['attn_in_w'][E:2 * E], p['attn_in_w'][2 * E:]
    bq = p['attn_in_b'][:E].reshape(1, E)
    bk = p['attn_in_b'][E:2 * E].reshape(1, E)
    bv = p['attn_in_b'][2 * E:].reshape(1, E)

    # head-block masks (trace-time constants, bf16)
    rows = np.arange(HS)[:, None]
    head_mask = jnp.asarray(((rows // S) == (np.arange(E)[None, :] // hd))
                            .astype(np.float32), dtype=bf)            # [HS, E]
    block_ones = jnp.asarray(((rows // S) == (np.arange(HS)[None, :] // S))
                             .astype(np.float32), dtype=bf)           # [HS, HS]

    img3 = img.reshape(B, 1, img_dim).astype(f32)

    args = (
        q_tok.astype(bf),                                             # [B, Nq, E]
        img3,                                                         # [B, 1, img_dim]
        voxel_pe.astype(f32),                                         # [Nq, E]
        condition_pe.astype(f32),                                     # [S, E]
        p['k_w'].T.astype(bf), p['k_b'].reshape(1, E).astype(f32),
        p['k_ln_g'].reshape(1, E).astype(f32), p['k_ln_b'].reshape(1, E).astype(f32),
        p['v_w'].T.astype(bf), p['v_b'].reshape(1, E).astype(f32),
        p['v_ln_g'].reshape(1, E).astype(f32), p['v_ln_b'].reshape(1, E).astype(f32),
        Wq.T.astype(bf), Wk.T.astype(bf), Wv.T.astype(bf),
        bq.astype(f32), bk.astype(f32), bv.astype(f32),
        p['attn_out_w'].T.astype(bf), p['attn_out_b'].reshape(1, E).astype(f32),
        head_mask, block_ones,
    )

    def batch_spec(shape):
        return pl.BlockSpec(shape, lambda b: (b,) + (0,) * (len(shape) - 1))

    def const_spec(shape):
        return pl.BlockSpec(shape, lambda b: (0,) * len(shape))

    in_specs = [
        batch_spec((1, Nq, E)),            # q tokens
        batch_spec((1, 1, img_dim)),       # img row
        const_spec((Nq, E)),               # voxel_pe
        const_spec((S, E)),                # condition_pe
        const_spec((img_dim, E)), const_spec((1, E)),   # k linear
        const_spec((1, E)), const_spec((1, E)),         # k layernorm
        const_spec((img_dim, E)), const_spec((1, E)),   # v linear
        const_spec((1, E)), const_spec((1, E)),         # v layernorm
        const_spec((E, E)), const_spec((E, E)), const_spec((E, E)),   # Wq Wk Wv
        const_spec((1, E)), const_spec((1, E)), const_spec((1, E)),   # bq bk bv
        const_spec((E, E)), const_spec((1, E)),                       # Wo bo
        const_spec((HS, E)), const_spec((HS, HS)),                    # masks
    ]

    est = (2 * (Nq * E * 2 + img_dim * 4)                 # per-batch blocks (dbl buf)
           + (Nq * E + S * E) * 4                         # PEs
           + 2 * img_dim * E * 2 + 4 * E * E * 2 + 8 * E * 4
           + HS * E * 2 + HS * HS * 2
           + 6 * Nq * HS * 4                              # score/softmax working set
           + (1 << 20))
    return pl.pallas_call(
        functools.partial(mha_kernel, num_heads=num_heads),
        out_shape=jax.ShapeDtypeStruct((B, Nq, E), out_dtype),
        grid=(B,),
        in_specs=in_specs,
        out_specs=batch_spec((1, Nq, E)),
        compiler_params=pltpu.CompilerParams(
            dimension_semantics=("parallel",),            # batch shards across v7x TCs
            vmem_limit_bytes=_vmem_limit(est)),
    )(*args)


# ------------------------------ module forward ------------------------------

def position_encoding(d_model, length):
    pe = np.zeros((length, d_model), np.float32)
    position = np.arange(length, dtype=np.float32)[:, None]
    div_term = np.exp(np.arange(0, d_model, 2, dtype=np.float32)
                      * -(math.log(10000.0) / d_model))
    pe[:, 0::2] = np.sin(position * div_term)
    pe[:, 1::2] = np.cos(position * div_term)
    return jnp.asarray(pe)


def mix_img_attention_forward(params, x, img, *, in_dim, out_dim, voxel_size, num_heads):
    B = x.shape[0]
    Vh = voxel_size // 2
    Nq = Vh ** 3

    # single NCDHW -> channels-last conversion at the module boundary
    x_cl = jnp.transpose(x, (0, 2, 3, 4, 1))                          # [B, D, H, W, C]

    # --- self.q: BN(eval)+LeakyReLU folded into the im2col prologue, Conv3d(k3,s2,p1) ---
    # (PyTorch calls self.q(x) twice; identical in eval mode, computed once.)
    q_scale = params['q_bn_gamma'] / jnp.sqrt(params['q_bn_var'] + EPS_BN)
    q_shift = params['q_bn_beta'] - params['q_bn_mean'] * q_scale
    x_act = _lrelu(x_cl * q_scale + q_shift).astype(jnp.bfloat16)     # bf16 before im2col
    q_vol = conv3d_cl(x_act, params['q_conv_w'], params['q_conv_b'],
                      stride=2, pad=1, activate=False,
                      out_dtype=jnp.bfloat16)                         # [B, Vh, Vh, Vh, C]

    # --- fused (k/v Linear+LayerNorm + PE adds + MHA), one call, grid over batch ---
    q_tok = q_vol.reshape(B, Nq, in_dim)
    attn = mha_pallas(q_tok, img, params['voxel_pe'], params['condition_pe'], params,
                      num_heads=num_heads, out_dtype=jnp.bfloat16)    # [B, Nq, C]
    attn_vol = attn.reshape(B, Vh, Vh, Vh, in_dim)

    # --- concat + mix: Conv3d(k3,s1,p1) with BN(eval) folded into W/b, LeakyReLU fused ---
    mix_scale = params['mix_bn_gamma'] / jnp.sqrt(params['mix_bn_var'] + EPS_BN)
    mix_shift = params['mix_bn_beta'] - params['mix_bn_mean'] * mix_scale
    w_fold = params['mix_conv_w'] * mix_scale[:, None, None, None, None]
    b_fold = params['mix_conv_b'] * mix_scale + mix_shift
    mixed_in = jnp.concatenate([q_vol, attn_vol], axis=-1)            # bf16 [B,Vh,Vh,Vh,2C]
    out_cl = conv3d_cl(mixed_in, w_fold, b_fold, stride=1, pad=1,
                       activate=True, out_dtype=jnp.float32)
    # TODO(synk): Dropout / training-mode batch statistics not implemented (inference).
    return jnp.transpose(out_cl, (0, 4, 1, 2, 3))                     # back to NCDHW once


def init_params(key, in_dim, out_dim, img_dim, voxel_size):
    ks = jax.random.split(key, 9)
    E = in_dim
    fan_q = in_dim * 27
    fan_mix = 2 * in_dim * 27
    p = dict(
        q_bn_gamma=1.0 + 0.02 * jax.random.normal(ks[0], (in_dim,)),
        q_bn_beta=jnp.zeros((in_dim,)),
        q_bn_mean=jnp.zeros((in_dim,)),
        q_bn_var=jnp.ones((in_dim,)),
        q_conv_w=jax.random.normal(ks[1], (in_dim, in_dim, 3, 3, 3)) * math.sqrt(2.0 / fan_q),
        q_conv_b=0.01 * jax.random.normal(ks[2], (in_dim,)),
        k_w=0.05 * jax.random.normal(ks[3], (in_dim, img_dim)),
        k_b=jnp.zeros((in_dim,)),
        k_ln_g=jnp.ones((in_dim,)),
        k_ln_b=jnp.zeros((in_dim,)),
        v_w=0.05 * jax.random.normal(ks[4], (in_dim, img_dim)),
        v_b=jnp.zeros((in_dim,)),
        v_ln_g=jnp.ones((in_dim,)),
        v_ln_b=jnp.zeros((in_dim,)),
        attn_in_w=0.05 * jax.random.normal(ks[5], (3 * E, E)),
        attn_in_b=jnp.zeros((3 * E,)),
        attn_out_w=0.05 * jax.random.normal(ks[6], (E, E)),
        attn_out_b=jnp.zeros((E,)),
        mix_conv_w=jax.random.normal(ks[7], (out_dim, 2 * in_dim, 3, 3, 3)) * math.sqrt(2.0 / fan_mix),
        mix_conv_b=0.01 * jax.random.normal(ks[8], (out_dim,)),
        mix_bn_gamma=jnp.ones((out_dim,)),
        mix_bn_beta=jnp.zeros((out_dim,)),
        mix_bn_mean=jnp.zeros((out_dim,)),
        mix_bn_var=jnp.ones((out_dim,)),
        voxel_pe=position_encoding(in_dim, (voxel_size // 2) ** 3),
        condition_pe=position_encoding(in_dim, out_dim),
    )
    return {k: v.astype(jnp.float32) for k, v in p.items()}


if __name__ == "__main__":
    in_dim, out_dim, img_dim, voxel_size, num_heads = 8, 16, 32, 8, 4
    B = 2

    key = jax.random.PRNGKey(0)
    kx, kimg, kp = jax.random.split(key, 3)
    x = jax.random.normal(kx, (B, in_dim, voxel_size, voxel_size, voxel_size), jnp.float32)
    img = jax.random.normal(kimg, (B, img_dim), jnp.float32)
    params = init_params(kp, in_dim, out_dim, img_dim, voxel_size)

    fwd = jax.jit(functools.partial(mix_img_attention_forward, in_dim=in_dim,
                                    out_dim=out_dim, voxel_size=voxel_size,
                                    num_heads=num_heads))
    out = fwd(params, x, img)
    out = jax.block_until_ready(out)
    assert out.shape == (B, out_dim, voxel_size // 2, voxel_size // 2, voxel_size // 2)
    assert out.dtype == jnp.float32
    assert bool(jnp.all(jnp.isfinite(out)))
    print("KERNEL_OK")
</pallas_src>

<mosaic_0001>
module attributes {stable_mosaic.version = 11 : i64} {
  func.func @matmul_bias_kernel(%arg0: i32, %arg1: memref<128x216xbf16, #tpu.memory_space<vmem>>, %arg2: memref<216x128xbf16, #tpu.memory_space<vmem>>, %arg3: memref<1x128xf32, #tpu.memory_space<vmem>>, %arg4: memref<128x128xbf16, #tpu.memory_space<vmem>>) attributes {dimension_semantics = [#tpu.dimension_semantics<parallel>], iteration_bounds = array<i64: 1>, scalar_prefetch = 0 : i64, scratch_operands = 0 : i64, tpu.core_type = #tpu.core_type<tc>, window_params = [{transform_indices = @transform_0, window_bounds = array<i64: 128, 216>}, {pipeline_mode = #tpu.pipeline_mode<synchronous>, transform_indices = @transform_1, window_bounds = array<i64: 216, 128>}, {pipeline_mode = #tpu.pipeline_mode<synchronous>, transform_indices = @transform_2, window_bounds = array<i64: 1, 128>}, {transform_indices = @transform_3, window_bounds = array<i64: 128, 128>}]} {
    %c0 = arith.constant 0 : index
    %c0_0 = arith.constant 0 : index
    %0 = vector.load %arg1[%c0, %c0_0] : memref<128x216xbf16, #tpu.memory_space<vmem>>, vector<128x216xbf16>
    %c0_1 = arith.constant 0 : index
    %c0_2 = arith.constant 0 : index
    %1 = vector.load %arg2[%c0_1, %c0_2] : memref<216x128xbf16, #tpu.memory_space<vmem>>, vector<216x128xbf16>
    %cst = arith.constant dense<0.000000e+00> : vector<128x128xf32>
    %2 = tpu.matmul %0, %1, %cst {dimension_numbers = #tpu.dot_dimension_numbers<[1], [0], [0], [1], [0, 0, 1, 1], [], []>} : vector<128x216xbf16>, vector<216x128xbf16>, vector<128x128xf32> -> vector<128x128xf32>
    %c0_3 = arith.constant 0 : index
    %c0_4 = arith.constant 0 : index
    %3 = vector.load %arg3[%c0_3, %c0_4] : memref<1x128xf32, #tpu.memory_space<vmem>>, vector<1x128xf32>
    %4 = vector.broadcast %3 : vector<1x128xf32> to vector<128x128xf32>
    %5 = arith.addf %2, %4 : vector<128x128xf32>
    %6 = arith.truncf %5 : vector<128x128xf32> to vector<128x128xbf16>
    %c0_5 = arith.constant 0 : index
    %c0_6 = arith.constant 0 : index
    %7 = vector.load %arg4[%c0_5, %c0_6] : memref<128x128xbf16, #tpu.memory_space<vmem>>, vector<128x128xbf16>
    tpu.vector_store %arg4[%c0_5, %c0_6], %6 {strides = array<i32>} : memref<128x128xbf16, #tpu.memory_space<vmem>>, vector<128x128xbf16>,
    return
  }
  func.func @transform_0(%arg0: i32) -> (i32, i32) {
    %c0_i32 = arith.constant 0 : i32
    %c0_i32_0 = arith.constant 0 : i32
    return %arg0, %c0_i32 : i32, i32
  }
  func.func @transform_1(%arg0: i32) -> (i32, i32) {
    %c0_i32 = arith.constant 0 : i32
    %c0_i32_0 = arith.constant 0 : i32
    %c0_i32_1 = arith.constant 0 : i32
    return %c0_i32, %c0_i32_0 : i32, i32
  }
  func.func @transform_2(%arg0: i32) -> (i32, i32) {
    %c0_i32 = arith.constant 0 : i32
    %c0_i32_0 = arith.constant 0 : i32
    %c0_i32_1 = arith.constant 0 : i32
    return %c0_i32, %c0_i32_0 : i32, i32
  }
  func.func @transform_3(%arg0: i32) -> (i32, i32) {
    %c0_i32 = arith.constant 0 : i32
    %c0_i32_0 = arith.constant 0 : i32
    return %arg0, %c0_i32 : i32, i32
  }
}

module attributes {stable_mosaic.version = 11 : i64} {
  func.func @mha_kernel(%arg0: i32, %arg1: memref<1x64x8xbf16, #tpu.memory_space<vmem>>, %arg2: memref<1x1x32xf32, #tpu.memory_space<vmem>>, %arg3: memref<64x8xf32, #tpu.memory_space<vmem>>, %arg4: memref<16x8xf32, #tpu.memory_space<vmem>>, %arg5: memref<32x8xbf16, #tpu.memory_space<vmem>>, %arg6: memref<1x8xf32, #tpu.memory_space<vmem>>, %arg7: memref<1x8xf32, #tpu.memory_space<vmem>>, %arg8: memref<1x8xf32, #tpu.memory_space<vmem>>, %arg9: memref<32x8xbf16, #tpu.memory_space<vmem>>, %arg10: memref<1x8xf32, #tpu.memory_space<vmem>>, %arg11: memref<1x8xf32, #tpu.memory_space<vmem>>, %arg12: memref<1x8xf32, #tpu.memory_space<vmem>>, %arg13: memref<8x8xbf16, #tpu.memory_space<vmem>>, %arg14: memref<8x8xbf16, #tpu.memory_space<vmem>>, %arg15: memref<8x8xbf16, #tpu.memory_space<vmem>>, %arg16: memref<1x8xf32, #tpu.memory_space<vmem>>, %arg17: memref<1x8xf32, #tpu.memory_space<vmem>>, %arg18: memref<1x8xf32, #tpu.memory_space<vmem>>, %arg19: memref<8x8xbf16, #tpu.memory_space<vmem>>, %arg20: memref<1x8xf32, #tpu.memory_space<vmem>>, %arg21: memref<64x8xbf16, #tpu.memory_space<vmem>>, %arg22: memref<64x64xbf16, #tpu.memory_space<vmem>>, %arg23: memref<1x64x8xbf16, #tpu.memory_space<vmem>>) attributes {dimension_semantics = [#tpu.dimension_semantics<parallel>], iteration_bounds = array<i64: 2>, scalar_prefetch = 0 : i64, scratch_operands = 0 : i64, tpu.core_type = #tpu.core_type<tc>, window_params = [{transform_indices = @transform_0, window_bounds = array<i64: 1, 64, 8>}, {transform_indices = @transform_1, window_bounds = array<i64: 1, 1, 32>}, {pipeline_mode = #tpu.pipeline_mode<synchronous>, transform_indices = @transform_2, window_bounds = array<i64: 64, 8>}, {pipeline_mode = #tpu.pipeline_mode<synchronous>, transform_indices = @transform_3, window_bounds = array<i64: 16, 8>}, {pipeline_mode = #tpu.pipeline_mode<synchronous>, transform_indices = @transform_4, window_bounds = array<i64: 32, 8>}, {pipeline_mode = #tpu.pipeline_mode<synchronous>, transform_indices = @transform_5, window_bounds = array<i64: 1, 8>}, {pipeline_mode = #tpu.pipeline_mode<synchronous>, transform_indices = @transform_6, window_bounds = array<i64: 1, 8>}, {pipeline_mode = #tpu.pipeline_mode<synchronous>, transform_indices = @transform_7, window_bounds = array<i64: 1, 8>}, {pipeline_mode = #tpu.pipeline_mode<synchronous>, transform_indices = @transform_8, window_bounds = array<i64: 32, 8>}, {pipeline_mode = #tpu.pipeline_mode<synchronous>, transform_indices = @transform_9, window_bounds = array<i64: 1, 8>}, {pipeline_mode = #tpu.pipeline_mode<synchronous>, transform_indices = @transform_10, window_bounds = array<i64: 1, 8>}, {pipeline_mode = #tpu.pipeline_mode<synchronous>, transform_indices = @transform_11, window_bounds = array<i64: 1, 8>}, {pipeline_mode = #tpu.pipeline_mode<synchronous>, transform_indices = @transform_12, window_bounds = array<i64: 8, 8>}, {pipeline_mode = #tpu.pipeline_mode<synchronous>, transform_indices = @transform_13, window_bounds = array<i64: 8, 8>}, {pipeline_mode = #tpu.pipeline_mode<synchronous>, transform_indices = @transform_14, window_bounds = array<i64: 8, 8>}, {pipeline_mode = #tpu.pipeline_mode<synchronous>, transform_indices = @transform_15, window_bounds = array<i64: 1, 8>}, {pipeline_mode = #tpu.pipeline_mode<synchronous>, transform_indices = @transform_16, window_bounds = array<i64: 1, 8>}, {pipeline_mode = #tpu.pipeline_mode<synchronous>, transform_indices = @transform_17, window_bounds = array<i64: 1, 8>}, {pipeline_mode = #tpu.pipeline_mode<synchronous>, transform_indices = @transform_18, window_bounds = array<i64: 8, 8>}, {pipeline_mode = #tpu.pipeline_mode<synchronous>, transform_indices = @transform_19, window_bounds = array<i64: 1, 8>}, {pipeline_mode = #tpu.pipeline_mode<synchronous>, transform_indices = @transform_20, window_bounds = array<i64: 64, 8>}, {pipeline_mode = #tpu.pipeline_mode<synchronous>, transform_indices = @transform_21, window_bounds = array<i64: 64, 64>}, {transform_indices = @transform_22, window_bounds = array<i64: 1, 64, 8>}]} {
    %c0 = arith.constant 0 : index
    %c0_0 = arith.constant 0 : index
    %c0_1 = arith.constant 0 : index
    %0 = vector.load %arg2[%c0, %c0_0, %c0_1] : memref<1x1x32xf32, #tpu.memory_space<vmem>>, vector<1x1x32xf32>
    %1 = vector.shape_cast %0 : vector<1x1x32xf32> to vector<1x32xf32>
    %2 = arith.truncf %1 : vector<1x32xf32> to vector<1x32xbf16>
    %c0_2 = arith.constant 0 : index
    %c0_3 = arith.constant 0 : index
    %3 = vector.load %arg5[%c0_2, %c0_3] : memref<32x8xbf16, #tpu.memory_space<vmem>>, vector<32x8xbf16>
    %cst = arith.constant dense<0.000000e+00> : vector<1x8xf32>
    %4 = tpu.matmul %2, %3, %cst {dimension_numbers = #tpu.dot_dimension_numbers<[1], [0], [0], [1], [0, 0, 1, 1], [], []>} : vector<1x32xbf16>, vector<32x8xbf16>, vector<1x8xf32> -> vector<1x8xf32>
    %c0_4 = arith.constant 0 : index
    %c0_5 = arith.constant 0 : index
    %5 = vector.load %arg6[%c0_4, %c0_5] : memref<1x8xf32, #tpu.memory_space<vmem>>, vector<1x8xf32>
    %6 = arith.addf %4, %5 : vector<1x8xf32>
    %c0_6 = arith.constant 0 : index
    %c0_7 = arith.constant 0 : index
    %7 = vector.load %arg7[%c0_6, %c0_7] : memref<1x8xf32, #tpu.memory_space<vmem>>, vector<1x8xf32>
    %c0_8 = arith.constant 0 : index
    %c0_9 = arith.constant 0 : index
    %8 = vector.load %arg8[%c0_8, %c0_9] : memref<1x8xf32, #tpu.memory_space<vmem>>, vector<1x8xf32>
    %cst_10 = arith.constant dense<0.000000e+00> : vector<1xf32>
    %9 = vector.multi_reduction <add>, %6, %cst_10 [1] : vector<1x8xf32> to vector<1xf32>
    %10 = vector.shape_cast %9 : vector<1xf32> to vector<1x1xf32>
    %cst_11 = arith.constant 8.000000e+00 : f32
    %11 = vector.broadcast %cst_11 : f32 to vector<1x1xf32>
    %12 = arith.divf %10, %11 : vector<1x1xf32>
    %13 = vector.broadcast %12 : vector<1x1xf32> to vector<1x8xf32>
    %14 = arith.subf %6, %13 : vector<1x8xf32>
    %15 = arith.mulf %14, %14 : vector<1x8xf32>
    %cst_12 = arith.constant dense<0.000000e+00> : vector<1xf32>
    %16 = vector.multi_reduction <add>, %15, %cst_12 [1] : vector<1x8xf32> to vector<1xf32>
    %17 = vector.shape_cast %16 : vector<1xf32> to vector<1x1xf32>
    %cst_13 = arith.constant 8.000000e+00 : f32
    %18 = vector.broadcast %cst_13 : f32 to vector<1x1xf32>
    %19 = arith.divf %17, %18 : vector<1x1xf32>
    %20 = vector.broadcast %12 : vector<1x1xf32> to vector<1x8xf32>
    %21 = arith.subf %6, %20 : vector<1x8xf32>
    %cst_14 = arith.constant 9.99999974E-6 : f32
    %22 = vector.broadcast %cst_14 : f32 to vector<1x1xf32>
    %23 = arith.addf %19, %22 : vector<1x1xf32>
    %24 = math.rsqrt %23 : vector<1x1xf32>
    %25 = vector.broadcast %24 : vector<1x1xf32> to vector<1x8xf32>
    %26 = arith.mulf %21, %25 : vector<1x8xf32>
    %27 = arith.mulf %26, %7 : vector<1x8xf32>
    %28 = arith.addf %27, %8 : vector<1x8xf32>
    %c0_15 = arith.constant 0 : index
    %c0_16 = arith.constant 0 : index
    %29 = vector.load %arg9[%c0_15, %c0_16] : memref<32x8xbf16, #tpu.memory_space<vmem>>, vector<32x8xbf16>
    %cst_17 = arith.constant dense<0.000000e+00> : vector<1x8xf32>
    %30 = tpu.matmul %2, %29, %cst_17 {dimension_numbers = #tpu.dot_dimension_numbers<[1], [0], [0], [1], [0, 0, 1, 1], [], []>} : vector<1x32xbf16>, vector<32x8xbf16>, vector<1x8xf32> -> vector<1x8xf32>
    %c0_18 = arith.constant 0 : index
    %c0_19 = arith.constant 0 : index
    %31 = vector.load %arg10[%c0_18, %c0_19] : memref<1x8xf32, #tpu.memory_space<vmem>>, vector<1x8xf32>
    %32 = arith.addf %30, %31 : vector<1x8xf32>
    %c0_20 = arith.constant 0 : index
    %c0_21 = arith.constant 0 : index
    %33 = vector.load %arg11[%c0_20, %c0_21] : memref<1x8xf32, #tpu.memory_space<vmem>>, vector<1x8xf32>
    %c0_22 = arith.constant 0 : index
    %c0_23 = arith.constant 0 : index
    %34 = vector.load %arg12[%c0_22, %c0_23] : memref<1x8xf32, #tpu.memory_space<vmem>>, vector<1x8xf32>
    %cst_24 = arith.constant dense<0.000000e+00> : vector<1xf32>
    %35 = vector.multi_reduction <add>, %32, %cst_24 [1] : vector<1x8xf32> to vector<1xf32>
    %36 = vector.shape_cast %35 : vector<1xf32> to vector<1x1xf32>
    %cst_25 = arith.constant 8.000000e+00 : f32
    %37 = vector.broadcast %cst_25 : f32 to vector<1x1xf32>
    %38 = arith.divf %36, %37 : vector<1x1xf32>
    %39 = vector.broadcast %38 : vector<1x1xf32> to vector<1x8xf32>
    %40 = arith.subf %32, %39 : vector<1x8xf32>
    %41 = arith.mulf %40, %40 : vector<1x8xf32>
    %cst_26 = arith.constant dense<0.000000e+00> : vector<1xf32>
    %42 = vector.multi_reduction <add>, %41, %cst_26 [1] : vector<1x8xf32> to vector<1xf32>
    %43 = vector.shape_cast %42 : vector<1xf32> to vector<1x1xf32>
    %cst_27 = arith.constant 8.000000e+00 : f32
    %44 = vector.broadcast %cst_27 : f32 to vector<1x1xf32>
    %45 = arith.divf %43, %44 : vector<1x1xf32>
    %46 = vector.broadcast %38 : vector<1x1xf32> to vector<1x8xf32>
    %47 = arith.subf %32, %46 : vector<1x8xf32>
    %cst_28 = arith.constant 9.99999974E-6 : f32
    %48 = vector.broadcast %cst_28 : f32 to vector<1x1xf32>
    %49 = arith.addf %45, %48 : vector<1x1xf32>
    %50 = math.rsqrt %49 : vector<1x1xf32>
    %51 = vector.broadcast %50 : vector<1x1xf32> to vector<1x8xf32>
    %52 = arith.mulf %47, %51 : vector<1x8xf32>
    %53 = arith.mulf %52, %33 : vector<1x8xf32>
    %54 = arith.addf %53, %34 : vector<1x8xf32>
    %c0_29 = arith.constant 0 : index
    %c0_30 = arith.constant 0 : index
    %55 = vector.load %arg4[%c0_29, %c0_30] : memref<16x8xf32, #tpu.memory_space<vmem>>, vector<16x8xf32>
    %56 = vector.broadcast %28 : vector<1x8xf32> to vector<16x8xf32>
    %57 = arith.addf %56, %55 : vector<16x8xf32>
    %c0_31 = arith.constant 0 : index
    %c0_32 = arith.constant 0 : index
    %58 = vector.load %arg4[%c0_31, %c0_32] : memref<16x8xf32, #tpu.memory_space<vmem>>, vector<16x8xf32>
    %59 = vector.broadcast %54 : vector<1x8xf32> to vector<16x8xf32>
    %60 = arith.addf %59, %58 : vector<16x8xf32>
    %c0_33 = arith.constant 0 : index
    %c0_34 = arith.constant 0 : index
    %c0_35 = arith.constant 0 : index
    %61 = vector.load %arg1[%c0_33, %c0_34, %c0_35] : memref<1x64x8xbf16, #tpu.memory_space<vmem>>, vector<1x64x8xbf16>
    %62 = vector.shape_cast %61 : vector<1x64x8xbf16> to vector<64x8xbf16>
    %63 = arith.extf %62 : vector<64x8xbf16> to vector<64x8xf32>
    %c0_36 = arith.constant 0 : index
    %c0_37 = arith.constant 0 : index
    %64 = vector.load %arg3[%c0_36, %c0_37] : memref<64x8xf32, #tpu.memory_space<vmem>>, vector<64x8xf32>
    %65 = arith.addf %63, %64 : vector<64x8xf32>
    %66 = arith.truncf %65 : vector<64x8xf32> to vector<64x8xbf16>
    %c0_38 = arith.constant 0 : index
    %c0_39 = arith.constant 0 : index
    %67 = vector.load %arg13[%c0_38, %c0_39] : memref<8x8xbf16, #tpu.memory_space<vmem>>, vector<8x8xbf16>
    %cst_40 = arith.constant dense<0.000000e+00> : vector<64x8xf32>
    %68 = tpu.matmul %66, %67, %cst_40 {dimension_numbers = #tpu.dot_dimension_numbers<[1], [0], [0], [1], [0, 0, 1, 1], [], []>} : vector<64x8xbf16>, vector<8x8xbf16>, vector<64x8xf32> -> vector<64x8xf32>
    %c0_41 = arith.constant 0 : index
    %c0_42 = arith.constant 0 : index
    %69 = vector.load %arg16[%c0_41, %c0_42] : memref<1x8xf32, #tpu.memory_space<vmem>>, vector<1x8xf32>
    %70 = vector.broadcast %69 : vector<1x8xf32> to vector<64x8xf32>
    %71 = arith.addf %68, %70 : vector<64x8xf32>
    %72 = arith.truncf %57 : vector<16x8xf32> to vector<16x8xbf16>
    %c0_43 = arith.constant 0 : index
    %c0_44 = arith.constant 0 : index
    %73 = vector.load %arg14[%c0_43, %c0_44] : memref<8x8xbf16, #tpu.memory_space<vmem>>, vector<8x8xbf16>
    %cst_45 = arith.constant dense<0.000000e+00> : vector<16x8xf32>
    %74 = tpu.matmul %72, %73, %cst_45 {dimension_numbers = #tpu.dot_dimension_numbers<[1], [0], [0], [1], [0, 0, 1, 1], [], []>} : vector<16x8xbf16>, vector<8x8xbf16>, vector<16x8xf32> -> vector<16x8xf32>
    %c0_46 = arith.constant 0 : index
    %c0_47 = arith.constant 0 : index
    %75 = vector.load %arg17[%c0_46, %c0_47] : memref<1x8xf32, #tpu.memory_space<vmem>>, vector<1x8xf32>
    %76 = vector.broadcast %75 : vector<1x8xf32> to vector<16x8xf32>
    %77 = arith.addf %74, %76 : vector<16x8xf32>
    %78 = arith.truncf %60 : vector<16x8xf32> to vector<16x8xbf16>
    %c0_48 = arith.constant 0 : index
    %c0_49 = arith.constant 0 : index
    %79 = vector.load %arg15[%c0_48, %c0_49] : memref<8x8xbf16, #tpu.memory_space<vmem>>, vector<8x8xbf16>
    %cst_50 = arith.constant dense<0.000000e+00> : vector<16x8xf32>
    %80 = tpu.matmul %78, %79, %cst_50 {dimension_numbers = #tpu.dot_dimension_numbers<[1], [0], [0], [1], [0, 0, 1, 1], [], []>} : vector<16x8xbf16>, vector<8x8xbf16>, vector<16x8xf32> -> vector<16x8xf32>
    %c0_51 = arith.constant 0 : index
    %c0_52 = arith.constant 0 : index
    %81 = vector.load %arg18[%c0_51, %c0_52] : memref<1x8xf32, #tpu.memory_space<vmem>>, vector<1x8xf32>
    %82 = vector.broadcast %81 : vector<1x8xf32> to vector<16x8xf32>
    %83 = arith.addf %80, %82 : vector<16x8xf32>
    %c0_53 = arith.constant 0 : index
    %c0_54 = arith.constant 0 : index
    %84 = vector.load %arg21[%c0_53, %c0_54] : memref<64x8xbf16, #tpu.memory_space<vmem>>, vector<64x8xbf16>
    %85 = arith.truncf %77 : vector<16x8xf32> to vector<16x8xbf16>
    %86 = vector.shape_cast %85 : vector<16x8xbf16> to vector<1x16x8xbf16>
    %87 = vector.shape_cast %86 : vector<1x16x8xbf16> to vector<1x16x8xbf16>
    %88 = vector.broadcast %87 : vector<1x16x8xbf16> to vector<4x16x8xbf16>
    %89 = vector.shape_cast %88 : vector<4x16x8xbf16> to vector<64x8xbf16>
    %90 = arith.mulf %89, %84 : vector<64x8xbf16>
    %91 = arith.truncf %83 : vector<16x8xf32> to vector<16x8xbf16>
    %92 = vector.shape_cast %91 : vector<16x8xbf16> to vector<1x16x8xbf16>
    %93 = vector.shape_cast %92 : vector<1x16x8xbf16> to vector<1x16x8xbf16>
    %94 = vector.broadcast %93 : vector<1x16x8xbf16> to vector<4x16x8xbf16>
    %95 = vector.shape_cast %94 : vector<4x16x8xbf16> to vector<64x8xbf16>
    %96 = arith.mulf %95, %84 : vector<64x8xbf16>
    %97 = arith.truncf %71 : vector<64x8xf32> to vector<64x8xbf16>
    %cst_55 = arith.constant dense<0.000000e+00> : vector<64x64xf32>
    %98 = tpu.matmul %97, %90, %cst_55 {dimension_numbers = #tpu.dot_dimension_numbers<[1], [1], [0], [0], [0, 0, 1, 0], [], []>} : vector<64x8xbf16>, vector<64x8xbf16>, vector<64x64xf32> -> vector<64x64xf32>
    %cst_56 = arith.constant 0.707106769 : f32
    %99 = vector.broadcast %cst_56 : f32 to vector<64x64xf32>
    %100 = arith.mulf %98, %99 : vector<64x64xf32>
    %cst_57 = arith.constant dense<0xFF800000> : vector<64xf32>
    %101 = vector.multi_reduction <maximumf>, %100, %cst_57 [1] : vector<64x64xf32> to vector<64xf32>
    %102 = vector.shape_cast %101 : vector<64xf32> to vector<64x1xf32>
    %103 = vector.broadcast %102 : vector<64x1xf32> to vector<64x64xf32>
    %104 = arith.subf %100, %103 : vector<64x64xf32>
    %105 = math.exp %104 : vector<64x64xf32>
    %106 = arith.truncf %105 : vector<64x64xf32> to vector<64x64xbf16>
    %c0_58 = arith.constant 0 : index
    %c0_59 = arith.constant 0 : index
    %107 = vector.load %arg22[%c0_58, %c0_59] : memref<64x64xbf16, #tpu.memory_space<vmem>>, vector<64x64xbf16>
    %cst_60 = arith.constant dense<0.000000e+00> : vector<64x64xf32>
    %108 = tpu.matmul %106, %107, %cst_60 {dimension_numbers = #tpu.dot_dimension_numbers<[1], [0], [0], [1], [0, 0, 1, 1], [], []>} : vector<64x64xbf16>, vector<64x64xbf16>, vector<64x64xf32> -> vector<64x64xf32>
    %cst_61 = arith.constant 1.000000e-30 : f32
    %109 = vector.broadcast %cst_61 : f32 to vector<64x64xf32>
    %110 = arith.maximumf %108, %109 : vector<64x64xf32>
    %111 = arith.extf %106 : vector<64x64xbf16> to vector<64x64xf32>
    %112 = tpu.reciprocal %110 {approx = true} : vector<64x64xf32> -> vector<64x64xf32>
    %113 = arith.mulf %111, %112 : vector<64x64xf32>
    %114 = arith.truncf %113 : vector<64x64xf32> to vector<64x64xbf16>
    %cst_62 = arith.constant dense<0.000000e+00> : vector<64x8xf32>
    %115 = tpu.matmul %114, %96, %cst_62 {dimension_numbers = #tpu.dot_dimension_numbers<[1], [0], [0], [1], [0, 0, 1, 1], [], []>} : vector<64x64xbf16>, vector<64x8xbf16>, vector<64x8xf32> -> vector<64x8xf32>
    %116 = arith.truncf %115 : vector<64x8xf32> to vector<64x8xbf16>
    %c0_63 = arith.constant 0 : index
    %c0_64 = arith.constant 0 : index
    %117 = vector.load %arg19[%c0_63, %c0_64] : memref<8x8xbf16, #tpu.memory_space<vmem>>, vector<8x8xbf16>
    %cst_65 = arith.constant dense<0.000000e+00> : vector<64x8xf32>
    %118 = tpu.matmul %116, %117, %cst_65 {dimension_numbers = #tpu.dot_dimension_numbers<[1], [0], [0], [1], [0, 0, 1, 1], [], []>} : vector<64x8xbf16>, vector<8x8xbf16>, vector<64x8xf32> -> vector<64x8xf32>
    %c0_66 = arith.constant 0 : index
    %c0_67 = arith.constant 0 : index
    %119 = vector.load %arg20[%c0_66, %c0_67] : memref<1x8xf32, #tpu.memory_space<vmem>>, vector<1x8xf32>
    %120 = vector.broadcast %119 : vector<1x8xf32> to vector<64x8xf32>
    %121 = arith.addf %118, %120 : vector<64x8xf32>
    %122 = arith.truncf %121 : vector<64x8xf32> to vector<64x8xbf16>
    %c0_68 = arith.constant 0 : index
    %c0_69 = arith.constant 0 : index
    %c0_70 = arith.constant 0 : index
    %123 = vector.load %arg23[%c0_68, %c0_69, %c0_70] : memref<1x64x8xbf16, #tpu.memory_space<vmem>>, vector<1x64x8xbf16>
    %124 = vector.shape_cast %123 : vector<1x64x8xbf16> to vector<64x8xbf16>
    %125 = vector.shape_cast %122 : vector<64x8xbf16> to vector<1x64x8xbf16>
    tpu.vector_store %arg23[%c0_68, %c0_69, %c0_70], %125 {strides = array<i32>} : memref<1x64x8xbf16, #tpu.memory_space<vmem>>, vector<1x64x8xbf16>,
    return
  }
  func.func @transform_0(%arg0: i32) -> (i32, i32, i32) {
    %c0_i32 = arith.constant 0 : i32
    %c0_i32_0 = arith.constant 0 : i32
    %c0_i32_1 = arith.constant 0 : i32
    return %arg0, %c0_i32, %c0_i32_0 : i32, i32, i32
  }
  func.func @transform_1(%arg0: i32) -> (i32, i32, i32) {
    %c0_i32 = arith.constant 0 : i32
    %c0_i32_0 = arith.constant 0 : i32
    %c0_i32_1 = arith.constant 0 : i32
    return %arg0, %c0_i32, %c0_i32_0 : i32, i32, i32
  }
  func.func @transform_2(%arg0: i32) -> (i32, i32) {
    %c0_i32 = arith.constant 0 : i32
    %c0_i32_0 = arith.constant 0 : i32
    %c0_i32_1 = arith.constant 0 : i32
    return %c0_i32, %c0_i32_0 : i32, i32
  }
  func.func @transform_3(%arg0: i32) -> (i32, i32) {
    %c0_i32 = arith.constant 0 : i32
    %c0_i32_0 = arith.constant 0 : i32
    %c0_i32_1 = arith.constant 0 : i32
    return %c0_i32, %c0_i32_0 : i32, i32
  }
  func.func @transform_4(%arg0: i32) -> (i32, i32) {
    %c0_i32 = arith.constant 0 : i32
    %c0_i32_0 = arith.constant 0 : i32
    %c0_i32_1 = arith.constant 0 : i32
    return %c0_i32, %c0_i32_0 : i32, i32
  }
  func.func @transform_5(%arg0: i32) -> (i32, i32) {
    %c0_i32 = arith.constant 0 : i32
    %c0_i32_0 = arith.constant 0 : i32
    %c0_i32_1 = arith.constant 0 : i32
    return %c0_i32, %c0_i32_0 : i32, i32
  }
  func.func @transform_6(%arg0: i32) -> (i32, i32) {
    %c0_i32 = arith.constant 0 : i32
    %c0_i32_0 = arith.constant 0 : i32
    %c0_i32_1 = arith.constant 0 : i32
    return %c0_i32, %c0_i32_0 : i32, i32
  }
  func.func @transform_7(%arg0: i32) -> (i32, i32) {
    %c0_i32 = arith.constant 0 : i32
    %c0_i32_0 = arith.constant 0 : i32
    %c0_i32_1 = arith.constant 0 : i32
    return %c0_i32, %c0_i32_0 : i32, i32
  }
  func.func @transform_8(%arg0: i32) -> (i32, i32) {
    %c0_i32 = arith.constant 0 : i32
    %c0_i32_0 = arith.constant 0 : i32
    %c0_i32_1 = arith.constant 0 : i32
    return %c0_i32, %c0_i32_0 : i32, i32
  }
  func.func @transform_9(%arg0: i32) -> (i32, i32) {
    %c0_i32 = arith.constant 0 : i32
    %c0_i32_0 = arith.constant 0 : i32
    %c0_i32_1 = arith.constant 0 : i32
    return %c0_i32, %c0_i32_0 : i32, i32
  }
  func.func @transform_10(%arg0: i32) -> (i32, i32) {
    %c0_i32 = arith.constant 0 : i32
    %c0_i32_0 = arith.constant 0 : i32
    %c0_i32_1 = arith.constant 0 : i32
    return %c0_i32, %c0_i32_0 : i32, i32
  }
  func.func @transform_11(%arg0: i32) -> (i32, i32) {
    %c0_i32 = arith.constant 0 : i32
    %c0_i32_0 = arith.constant 0 : i32
    %c0_i32_1 = arith.constant 0 : i32
    return %c0_i32, %c0_i32_0 : i32, i32
  }
  func.func @transform_12(%arg0: i32) -> (i32, i32) {
    %c0_i32 = arith.constant 0 : i32
    %c0_i32_0 = arith.constant 0 : i32
    %c0_i32_1 = arith.constant 0 : i32
    return %c0_i32, %c0_i32_0 : i32, i32
  }
  func.func @transform_13(%arg0: i32) -> (i32, i32) {
    %c0_i32 = arith.constant 0 : i32
    %c0_i32_0 = arith.constant 0 : i32
    %c0_i32_1 = arith.constant 0 : i32
    return %c0_i32, %c0_i32_0 : i32, i32
  }
  func.func @transform_14(%arg0: i32) -> (i32, i32) {
    %c0_i32 = arith.constant 0 : i32
    %c0_i32_0 = arith.constant 0 : i32
    %c0_i32_1 = arith.constant 0 : i32
    return %c0_i32, %c0_i32_0 : i32, i32
  }
  func.func @transform_15(%arg0: i32) -> (i32, i32) {
    %c0_i32 = arith.constant 0 : i32
    %c0_i32_0 = arith.constant 0 : i32
    %c0_i32_1 = arith.constant 0 : i32
    return %c0_i32, %c0_i32_0 : i32, i32
  }
  func.func @transform_16(%arg0: i32) -> (i32, i32) {
    %c0_i32 = arith.constant 0 : i32
    %c0_i32_0 = arith.constant 0 : i32
    %c0_i32_1 = arith.constant 0 : i32
    return %c0_i32, %c0_i32_0 : i32, i32
  }
  func.func @transform_17(%arg0: i32) -> (i32, i32) {
    %c0_i32 = arith.constant 0 : i32
    %c0_i32_0 = arith.constant 0 : i32
    %c0_i32_1 = arith.constant 0 : i32
    return %c0_i32, %c0_i32_0 : i32, i32
  }
  func.func @transform_18(%arg0: i32) -> (i32, i32) {
    %c0_i32 = arith.constant 0 : i32
    %c0_i32_0 = arith.constant 0 : i32
    %c0_i32_1 = arith.constant 0 : i32
    return %c0_i32, %c0_i32_0 : i32, i32
  }
  func.func @transform_19(%arg0: i32) -> (i32, i32) {
    %c0_i32 = arith.constant 0 : i32
    %c0_i32_0 = arith.constant 0 : i32
    %c0_i32_1 = arith.constant 0 : i32
    return %c0_i32, %c0_i32_0 : i32, i32
  }
  func.func @transform_20(%arg0: i32) -> (i32, i32) {
    %c0_i32 = arith.constant 0 : i32
    %c0_i32_0 = arith.constant 0 : i32
    %c0_i32_1 = arith.constant 0 : i32
    return %c0_i32, %c0_i32_0 : i32, i32
  }
  func.func @transform_21(%arg0: i32) -> (i32, i32) {
    %c0_i32 = arith.constant 0 : i32
    %c0_i32_0 = arith.constant 0 : i32
    %c0_i32_1 = arith.constant 0 : i32
    return %c0_i32, %c0_i32_0 : i32, i32
  }
  func.func @transform_22(%arg0: i32) -> (i32, i32, i32) {
    %c0_i32 = arith.constant 0 : i32
    %c0_i32_0 = arith.constant 0 : i32
    %c0_i32_1 = arith.constant 0 : i32
    return %arg0, %c0_i32, %c0_i32_0 : i32, i32, i32
  }
}

module attributes {stable_mosaic.version = 11 : i64} {
  func.func @matmul_bias_kernel(%arg0: i32, %arg1: memref<128x432xbf16, #tpu.memory_space<vmem>>, %arg2: memref<432x128xbf16, #tpu.memory_space<vmem>>, %arg3: memref<1x128xf32, #tpu.memory_space<vmem>>, %arg4: memref<128x128xf32, #tpu.memory_space<vmem>>) attributes {dimension_semantics = [#tpu.dimension_semantics<parallel>], iteration_bounds = array<i64: 1>, scalar_prefetch = 0 : i64, scratch_operands = 0 : i64, tpu.core_type = #tpu.core_type<tc>, window_params = [{transform_indices = @transform_0, window_bounds = array<i64: 128, 432>}, {pipeline_mode = #tpu.pipeline_mode<synchronous>, transform_indices = @transform_1, window_bounds = array<i64: 432, 128>}, {pipeline_mode = #tpu.pipeline_mode<synchronous>, transform_indices = @transform_2, window_bounds = array<i64: 1, 128>}, {transform_indices = @transform_3, window_bounds = array<i64: 128, 128>}]} {
    %c0 = arith.constant 0 : index
    %c0_0 = arith.constant 0 : index
    %0 = vector.load %arg1[%c0, %c0_0] : memref<128x432xbf16, #tpu.memory_space<vmem>>, vector<128x432xbf16>
    %c0_1 = arith.constant 0 : index
    %c0_2 = arith.constant 0 : index
    %1 = vector.load %arg2[%c0_1, %c0_2] : memref<432x128xbf16, #tpu.memory_space<vmem>>, vector<432x128xbf16>
    %cst = arith.constant dense<0.000000e+00> : vector<128x128xf32>
    %2 = tpu.matmul %0, %1, %cst {dimension_numbers = #tpu.dot_dimension_numbers<[1], [0], [0], [1], [0, 0, 1, 1], [], []>} : vector<128x432xbf16>, vector<432x128xbf16>, vector<128x128xf32> -> vector<128x128xf32>
    %c0_3 = arith.constant 0 : index
    %c0_4 = arith.constant 0 : index
    %3 = vector.load %arg3[%c0_3, %c0_4] : memref<1x128xf32, #tpu.memory_space<vmem>>, vector<1x128xf32>
    %4 = vector.broadcast %3 : vector<1x128xf32> to vector<128x128xf32>
    %5 = arith.addf %2, %4 : vector<128x128xf32>
    %cst_5 = arith.constant 0.000000e+00 : f32
    %6 = vector.broadcast %cst_5 : f32 to vector<128x128xf32>
    %7 = arith.cmpf oge, %5, %6 : vector<128x128xf32>
    %cst_6 = arith.constant 0.00999999977 : f32
    %8 = vector.broadcast %cst_6 : f32 to vector<128x128xf32>
    %9 = arith.mulf %8, %5 : vector<128x128xf32>
    %10 = arith.select %7, %5, %9 : vector<128x128xi1>, vector<128x128xf32>
    %c0_7 = arith.constant 0 : index
    %c0_8 = arith.constant 0 : index
    %11 = vector.load %arg4[%c0_7, %c0_8] : memref<128x128xf32, #tpu.memory_space<vmem>>, vector<128x128xf32>
    tpu.vector_store %arg4[%c0_7, %c0_8], %10 {strides = array<i32>} : memref<128x128xf32, #tpu.memory_space<vmem>>, vector<128x128xf32>,
    return
  }
  func.func @transform_0(%arg0: i32) -> (i32, i32) {
    %c0_i32 = arith.constant 0 : i32
    %c0_i32_0 = arith.constant 0 : i32
    return %arg0, %c0_i32 : i32, i32
  }
  func.func @transform_1(%arg0: i32) -> (i32, i32) {
    %c0_i32 = arith.constant 0 : i32
    %c0_i32_0 = arith.constant 0 : i32
    %c0_i32_1 = arith.constant 0 : i32
    return %c0_i32, %c0_i32_0 : i32, i32
  }
  func.func @transform_2(%arg0: i32) -> (i32, i32) {
    %c0_i32 = arith.constant 0 : i32
    %c0_i32_0 = arith.constant 0 : i32
    %c0_i32_1 = arith.constant 0 : i32
    return %c0_i32, %c0_i32_0 : i32, i32
  }
  func.func @transform_3(%arg0: i32) -> (i32, i32) {
    %c0_i32 = arith.constant 0 : i32
    %c0_i32_0 = arith.constant 0 : i32
    return %arg0, %c0_i32 : i32, i32
  }
}

</mosaic_0001>

<bundles_post_ra>
// kernel: mix_img_attention_forward.3
= control target key start
LH: loop header
LB: loop body
LE: loop exit
PB: predicated region body
PF: predicated region fallthrough
CT: control target
= control target key end

     0   :  { %vm240_vm0 = vcmask 1043456   ;;  %vm215_vm1 = vcmask 719872   ;;  %s807_s1 = inlined_call_operand.vmem [shape: bf16[216,128], index: 1, kind: input, shape index: {}]   ;;  %s808_s0 = inlined_call_operand.vmem [shape: bf16[128,216], index: 0, kind: input, shape index: {}]   ;;  %s809_s2 = inlined_call_operand.vmem [shape: f32[1,128], index: 2, kind: input, shape index: {}]   ;;  %s810_s3 = inlined_call_operand.vmem [shape: bf16[128,128], index: 3, kind: output, shape index: {}]  }
   0x1   :  { %v525_v0 = vld [vmem:[%s807_s1 + $0x38] sm:$0xff]  ;;  %v57_v1 = vld [vmem:[%s807_s1 + $0x68] sm:$0xf]  ;;  %v524_v3 = vld [vmem:[%s807_s1 + $0x30] sm:$0xff] }
   0x2   :  { %v187_v2 = vunpack.c.l.b16 %v57_v1  ;;  %244 = vmatpush.bf16.msra.mxu0 %v525_v0  ;;  %578 = vmatpush.bf16.msra.mxu2 %v525_v0  ;;  %v530_v6 = vld [vmem:[%s807_s1 + $0x60] sm:$0xff]  ;;  %v523_v7 = vld [vmem:[%s807_s1 + $0x28] sm:$0xff]  ;;  %v529_v8 = vld [vmem:[%s807_s1 + $0x58] sm:$0xff] }
   0x3   :  { %v522_v9 = vld [vmem:[%s807_s1 + $0x20] sm:$0xff]  ;;  %v528_v10 = vld [vmem:[%s807_s1 + $0x50] sm:$0xff]  ;;  %v521_v11 = vld [vmem:[%s807_s1 + $0x18] sm:$0xff] }
   0x4   :  { %v201_v4 = vpack.c.b16 %v187_v2, %v187_v2  ;;  %v527_v12 = vld [vmem:[%s807_s1 + $0x48] sm:$0xff]  ;;  %v520_v13 = vld [vmem:[%s807_s1 + $0x10] sm:$0xff]  ;;  %v526_v14 = vld [vmem:[%s807_s1 + $0x40] sm:$0xff] }
   0x5   :  { %v519_v15 = vld [vmem:[%s807_s1 + $0x8] sm:$0xff]  ;;  %v502_v16 = vld [vmem:[%s808_s0 + $0x4] sm:$0xf]  ;;  %v512_v18 = vld [vmem:[%s808_s0 + $0x54] sm:$0xf] }
   0x6   :  { %v242_v5 = vsel %vm240_vm0, %v201_v4, 0  ;;  %245 = vmatpush.bf16.msra.mxu0 %v524_v3  ;;  %579 = vmatpush.bf16.msra.mxu2 %v524_v3  ;;  %v382_v17 = vld [vmem:[%s808_s0 + $0x8] sm:$0xf0]  ;;  %v422_v19 = vld [vmem:[%s808_s0 + $0x58] sm:$0xf0]  ;;  %v518_v21 = vld [vmem:[%s807_s1] sm:$0xff] }
   0x7   :  { %295 = vmatpush.bf16.msra.mxu1 %v242_v5  ;;  %586 = vmatpush.bf16.msra.mxu3 %v242_v5  ;;  %v385_v20 = vor.u32 %v502_v16, %v382_v17  ;;  %v380_v22 = vld [vmem:[%s808_s0] sm:$0xf]  ;;  %v503_v23 = vld [vmem:[%s808_s0 + $0x4] sm:$0xf0]  ;;  %v425_v24 = vor.u32 %v512_v18, %v422_v19  ;;  %v504_v29 = vld [vmem:[%s808_s0 + $0x14] sm:$0xf] }
   0x8   :  { %v412_v25 = vld [vmem:[%s808_s0 + $0x40] sm:$0xf]  ;;  %v511_v26 = vld [vmem:[%s808_s0 + $0x44] sm:$0xf0]  ;;  %v381_v27 = vor.u32 %v503_v23, %v380_v22  ;;  %v390_v30 = vld [vmem:[%s808_s0 + $0x18] sm:$0xf0] }
   0x9   :  { %v413_v28 = vor.u32 %v511_v26, %v412_v25  ;;  %v514_v31 = vld [vmem:[%s808_s0 + $0x64] sm:$0xf]  ;;  %v430_v32 = vld [vmem:[%s808_s0 + $0x68] sm:$0xf0]  ;;  %v393_v33 = vor.u32 %v504_v29, %v390_v30  ;;  %v388_v34 = vld [vmem:[%s808_s0 + $0x10] sm:$0xf] }
   0xa   :  { %246 = vmatpush.bf16.msra.mxu0 %v523_v7  ;;  %580 = vmatpush.bf16.msra.mxu2 %v523_v7  ;;  %v505_v35 = vld [vmem:[%s808_s0 + $0x14] sm:$0xf0]  ;;  %v433_v36 = vor.u32 %v514_v31, %v430_v32  ;;  %v420_v37 = vld [vmem:[%s808_s0 + $0x50] sm:$0xf]  ;;  %v506_v41 = vld [vmem:[%s808_s0 + $0x24] sm:$0xf] }
   0xb   :  { %296 = vmatpush.bf16.msra.mxu1 %v530_v6  ;;  %587 = vmatpush.bf16.msra.mxu3 %v530_v6  ;;  %v513_v38 = vld [vmem:[%s808_s0 + $0x54] sm:$0xf0]  ;;  %v389_v39 = vor.u32 %v505_v35, %v388_v34  ;;  %v398_v42 = vld [vmem:[%s808_s0 + $0x28] sm:$0xf0]  ;;  %v516_v43 = vld [vmem:[%s808_s0 + $0x74] sm:$0xf] }
   0xc   :  { %v421_v40 = vor.u32 %v513_v38, %v420_v37  ;;  %v438_v44 = vld [vmem:[%s808_s0 + $0x78] sm:$0xf0]  ;;  %v401_v45 = vor.u32 %v506_v41, %v398_v42  ;;  %v396_v46 = vld [vmem:[%s808_s0 + $0x20] sm:$0xf]  ;;  %v507_v47 = vld [vmem:[%s808_s0 + $0x24] sm:$0xf0] }
   0xd   :  { %v441_v48 = vor.u32 %v516_v43, %v438_v44  ;;  %v428_v49 = vld [vmem:[%s808_s0 + $0x60] sm:$0xf]  ;;  %v515_v50 = vld [vmem:[%s808_s0 + $0x64] sm:$0xf0]  ;;  %v397_v51 = vor.u32 %v507_v47, %v396_v46  ;;  %v508_v53 = vld [vmem:[%s808_s0 + $0x34] sm:$0xf] }
   0xe   :  { %247 = vmatpush.bf16.msra.mxu0 %v522_v9  ;;  %581 = vmatpush.bf16.msra.mxu2 %v522_v9  ;;  %v429_v52 = vor.u32 %v515_v50, %v428_v49  ;;  %v406_v54 = vld [vmem:[%s808_s0 + $0x38] sm:$0xf0]  ;;  %v404_v56 = vld [vmem:[%s808_s0 + $0x30] sm:$0xf]  ;;  %v509_v57 = vld [vmem:[%s808_s0 + $0x34] sm:$0xf0] }
   0xf   :  { %297 = vmatpush.bf16.msra.mxu1 %v529_v8  ;;  %588 = vmatpush.bf16.msra.mxu3 %v529_v8  ;;  %v409_v55 = vor.u32 %v508_v53, %v406_v54  ;;  %v436_v58 = vld [vmem:[%s808_s0 + $0x70] sm:$0xf]  ;;  %v517_v59 = vld [vmem:[%s808_s0 + $0x74] sm:$0xf0]  ;;  %v405_v60 = vor.u32 %v509_v57, %v404_v56  ;;  %v510_v62 = vld [vmem:[%s808_s0 + $0x44] sm:$0xf] }
  0x10   :  { %v437_v61 = vor.u32 %v517_v59, %v436_v58  ;;  %v414_v63 = vld [vmem:[%s808_s0 + $0x48] sm:$0xf0]  ;;  %v762_v3 = vld [vmem:[%s809_s2] ss:$0 sm:$0xff] }
  0x11   :  { %v417_v0 = vor.u32 %v510_v62, %v414_v63 }
  0x12   :  { %248 = vmatpush.bf16.msra.mxu0 %v521_v11  ;;  %582 = vmatpush.bf16.msra.mxu2 %v521_v11 }
  0x13   :  { %298 = vmatpush.bf16.msra.mxu1 %v528_v10  ;;  %589 = vmatpush.bf16.msra.mxu3 %v528_v10 }
  0x16   :  { %249 = vmatpush.bf16.msra.mxu0 %v520_v13  ;;  %583 = vmatpush.bf16.msra.mxu2 %v520_v13 }
  0x17   :  { %299 = vmatpush.bf16.msra.mxu1 %v527_v12  ;;  %590 = vmatpush.bf16.msra.mxu3 %v527_v12 }
  0x1a   :  { %250 = vmatpush.bf16.msra.mxu0 %v519_v15  ;;  %584 = vmatpush.bf16.msra.mxu2 %v519_v15 }
  0x1b   :  { %300 = vmatpush.bf16.msra.mxu1 %v526_v14  ;;  %591 = vmatpush.bf16.msra.mxu3 %v526_v14 }
  0x1e   :  { %494 = vmatmul.msk.bf16.vlgmr.msra.gmra.mxu1 %vm215_vm1, %v385_v20  ;;  %251 = vmatpush.bf16.msra.mxu0 %v518_v21 }
  0x1f   :  { %499 = vmatmul.msk.bf16.vlgmr.msra.gmra.mxu3 %vm215_vm1, %v425_v24  ;;  %585 = vmatpush.bf16.msra.mxu2 %v518_v21 }
  0x21   :  { %252 = vmatmul.bf16.vlgmr.msra.gmra.mxu0 %v381_v27 }
  0x22   :  { %272 = vmatmul.bf16.vlgmr.msra.gmra.mxu2 %v413_v28 }
  0x2e   :  { %495 = vmatmul.msk.bf16.gmra.mxu1 %vm215_vm1, %v393_v33 }
  0x2f   :  { %500 = vmatmul.msk.bf16.gmra.mxu3 %vm215_vm1, %v433_v36 }
  0x31   :  { %257 = vmatmul.bf16.gmra.mxu0 %v389_v39 }
  0x32   :  { %277 = vmatmul.bf16.gmra.mxu2 %v421_v40 }
  0x3e   :  { %496 = vmatmul.msk.bf16.gmra.mxu1 %vm215_vm1, %v401_v45 }
  0x3f   :  { %501 = vmatmul.msk.bf16.gmra.mxu3 %vm215_vm1, %v441_v48 }
  0x41   :  { %262 = vmatmul.bf16.gmra.mxu0 %v397_v51 }
  0x42   :  { %282 = vmatmul.bf16.gmra.mxu2 %v429_v52 }
  0x4e   :  { %497 = vmatmul.msk.bf16.gmra.mxu1 %vm215_vm1, %v409_v55 }
  0x51   :  { %267 = vmatmul.bf16.gmra.mxu0 %v405_v60 }
  0x52   :  { %287 = vmatmul.bf16.gmra.mxu2 %v437_v61 }
  0x5e   :  { %498 = vmatmul.msk.bf16.gmra.mxu1 %vm215_vm1, %v417_v0 }
  0x9b   :  { %v302_v1 = vpop.f32.mrf.mxu1 }
  0x9e   :  { %v253_v2 = vpop.f32.mrf.mxu0 }
  0x9f   :  { %v254_v5 = vadd.f32 %v762_v3, %v253_v2 }
  0xa1   :  { %v303_v9 = vadd.f32 %v302_v1, %v254_v5 }
  0xa2   :  { %v327_v14 = vpop.f32.mrf.mxu3 }
  0xa3   :  { %v304_v4 = vpop.f32.mrf.mxu1 }
  0xa5   :  { %v765_v6 = vpop.f32.mrf.mxu2 }
  0xa6   :  { %v255_v7 = vpop.f32.mrf.mxu0 }
  0xa7   :  { %v256_v8 = vadd.f32 %v762_v3, %v255_v7 }
  0xa9   :  { %v305_v10 = vadd.f32 %v304_v4, %v256_v8  ;;  %v274_v4 = vadd.f32 %v762_v3, %v765_v6 }
  0xaa   :  { %v329_v21 = vpop.f32.mrf.mxu3 }
  0xab   :  { %v307_v11 = vpop.f32.mrf.mxu1  ;;  %v534_v12 = vpack.c.bf16 %v305_v10, %v303_v9 }
  0xad   :  { %535 = vst [vmem:[%s810_s3] sm:$0xff] %v534_v12   ;;  %v275_v13 = vpop.f32.mrf.mxu2 }
  0xae   :  { %v258_v15 = vpop.f32.mrf.mxu0  ;;  %v276_v5 = vadd.f32 %v762_v3, %v275_v13 }
  0xaf   :  { %v259_v17 = vadd.f32 %v762_v3, %v258_v15 }
  0xb1   :  { %v308_v22 = vadd.f32 %v307_v11, %v259_v17 }
  0xb2   :  { %v332_v32 = vpop.f32.mrf.mxu3 }
  0xb3   :  { %v309_v16 = vpop.f32.mrf.mxu1 }
  0xb5   :  { %v278_v18 = vpop.f32.mrf.mxu2 }
  0xb6   :  { %v260_v19 = vpop.f32.mrf.mxu0  ;;  %v279_v26 = vadd.f32 %v762_v3, %v278_v18 }
  0xb7   :  { %v261_v20 = vadd.f32 %v762_v3, %v260_v19 }
  0xb8   :  { %v328_v30 = vadd.f32 %v327_v14, %v279_v26 }
  0xb9   :  { %v310_v23 = vadd.f32 %v309_v16, %v261_v20 }
  0xba   :  { %v334_v43 = vpop.f32.mrf.mxu3 }
  0xbb   :  { %v312_v24 = vpop.f32.mrf.mxu1  ;;  %v539_v25 = vpack.c.bf16 %v310_v23, %v308_v22 }
  0xbd   :  { %571 = vst [vmem:[%s810_s3 + $0x8] sm:$0xff] %v539_v25   ;;  %v280_v27 = vpop.f32.mrf.mxu2 }
  0xbe   :  { %v281_v28 = vadd.f32 %v762_v3, %v280_v27  ;;  %v263_v29 = vpop.f32.mrf.mxu0 }
  0xbf   :  { %v264_v35 = vadd.f32 %v762_v3, %v263_v29 }
  0xc0   :  { %v330_v31 = vadd.f32 %v329_v21, %v281_v28 }
  0xc1   :  { %v313_v39 = vadd.f32 %v312_v24, %v264_v35 }
  0xc2   :  { %v559_v33 = vpack.c.bf16 %v330_v31, %v328_v30  ;;  %v337_v53 = vpop.f32.mrf.mxu3 }
  0xc3   :  { %v314_v34 = vpop.f32.mrf.mxu1 }
  0xc4   :  { %575 = vst [vmem:[%s810_s3 + $0x28] sm:$0xff] %v559_v33  }
  0xc5   :  { %v283_v36 = vpop.f32.mrf.mxu2 }
  0xc6   :  { %v265_v37 = vpop.f32.mrf.mxu0  ;;  %v284_v44 = vadd.f32 %v762_v3, %v283_v36 }
  0xc7   :  { %v266_v38 = vadd.f32 %v762_v3, %v265_v37 }
  0xc8   :  { %v333_v48 = vadd.f32 %v332_v32, %v284_v44 }
  0xc9   :  { %v315_v40 = vadd.f32 %v314_v34, %v266_v38 }
  0xca   :  { %v339_v0 = vpop.f32.mrf.mxu3 }
  0xcb   :  { %v317_v41 = vpop.f32.mrf.mxu1  ;;  %v544_v42 = vpack.c.bf16 %v315_v40, %v313_v39 }
  0xcd   :  { %572 = vst [vmem:[%s810_s3 + $0x10] sm:$0xff] %v544_v42   ;;  %v285_v45 = vpop.f32.mrf.mxu2 }
  0xce   :  { %v286_v46 = vadd.f32 %v762_v3, %v285_v45  ;;  %v268_v47 = vpop.f32.mrf.mxu0 }
  0xcf   :  { %v269_v52 = vadd.f32 %v762_v3, %v268_v47 }
  0xd0   :  { %v335_v49 = vadd.f32 %v334_v43, %v286_v46 }
  0xd1   :  { %v318_v57 = vadd.f32 %v317_v41, %v269_v52 }
  0xd2   :  { %v564_v50 = vpack.c.bf16 %v335_v49, %v333_v48 }
  0xd3   :  { %v319_v51 = vpop.f32.mrf.mxu1 }
  0xd4   :  { %576 = vst [vmem:[%s810_s3 + $0x30] sm:$0xff] %v564_v50  }
  0xd5   :  { %v288_v54 = vpop.f32.mrf.mxu2 }
  0xd6   :  { %v270_v55 = vpop.f32.mrf.mxu0  ;;  %v289_v61 = vadd.f32 %v762_v3, %v288_v54 }
  0xd7   :  { %v271_v56 = vadd.f32 %v762_v3, %v270_v55 }
  0xd8   :  { %v338_v1 = vadd.f32 %v337_v53, %v289_v61 }
  0xd9   :  { %v320_v58 = vadd.f32 %v319_v51, %v271_v56 }
  0xdb   :  { %v322_v59 = vpop.f32.mrf.mxu1  ;;  %v549_v60 = vpack.c.bf16 %v320_v58, %v318_v57 }
  0xdc   :  { %v323_v9 = vadd.f32 %v322_v59, %v274_v4 }
  0xdd   :  { %573 = vst [vmem:[%s810_s3 + $0x18] sm:$0xff] %v549_v60   ;;  %v290_v62 = vpop.f32.mrf.mxu2 }
  0xde   :  { %v291_v63 = vadd.f32 %v762_v3, %v290_v62 }
  0xe0   :  { %v340_v2 = vadd.f32 %v339_v0, %v291_v63 }
  0xe2   :  { %v569_v7 = vpack.c.bf16 %v340_v2, %v338_v1 }
  0xe3   :  { %v324_v8 = vpop.f32.mrf.mxu1 }
  0xe4   :  { %v325_v10 = vadd.f32 %v324_v8, %v276_v5  ;;  %577 = vst [vmem:[%s810_s3 + $0x38] sm:$0xff] %v569_v7  }
  0xe6   :  { %v554_v11 = vpack.c.bf16 %v325_v10, %v323_v9 }
  0xe8   :  { %574 = vst [vmem:[%s810_s3 + $0x20] sm:$0xff] %v554_v11  }

// kernel: mix_img_attention_forward.4
= control target key start
LH: loop header
LB: loop body
LE: loop exit
PB: predicated region body
PF: predicated region fallthrough
CT: control target
= control target key end

     0   :  { %s2002_s0 = inlined_call_operand.vmem [shape: bf16[2,64,8], index: 0, kind: input, shape index: {}]   ;;  %s2003_s1 = inlined_call_operand.vmem [shape: f32[2,1,32], index: 1, kind: input, shape index: {}]   ;;  %s2004_s2 = inlined_call_operand.vmem [shape: f32[64,8], index: 2, kind: input, shape index: {}]   ;;  %s2005_s3 = inlined_call_operand.vmem [shape: f32[16,8], index: 3, kind: input, shape index: {}]   ;;  %s2006_s4 = inlined_call_operand.vmem [shape: bf16[32,8], index: 4, kind: input, shape index: {}]   ;;  %s2007_s5 = inlined_call_operand.vmem [shape: f32[1,8], index: 5, kind: input, shape index: {}]   ;;  %s2008_s6 = inlined_call_operand.vmem [shape: f32[1,8], index: 6, kind: input, shape index: {}]   ;;  %s2009_s7 = inlined_call_operand.vmem [shape: f32[1,8], index: 7, kind: input, shape index: {}]   ;;  %s2010_s8 = inlined_call_operand.vmem [shape: bf16[32,8], index: 8, kind: input, shape index: {}]   ;;  %s2011_s9 = inlined_call_operand.vmem [shape: f32[1,8], index: 9, kind: input, shape index: {}]   ;;  %s2012_s10 = inlined_call_operand.vmem [shape: f32[1,8], index: 10, kind: input, shape index: {}]   ;;  %s2013_s11 = inlined_call_operand.vmem [shape: f32[1,8], index: 11, kind: input, shape index: {}]   ;;  %s2014_s12 = inlined_call_operand.vmem [shape: bf16[8,8], index: 12, kind: input, shape index: {}]   ;;  %s2015_s13 = inlined_call_operand.vmem [shape: bf16[8,8], index: 13, kind: input, shape index: {}]   ;;  %s2016_s14 = inlined_call_operand.vmem [shape: bf16[8,8], index: 14, kind: input, shape index: {}]   ;;  %s2017_s15 = inlined_call_operand.vmem [shape: f32[1,8], index: 15, kind: input, shape index: {}]   ;;  %s2018_s16 = inlined_call_operand.vmem [shape: f32[1,8], index: 16, kind: input, shape index: {}]   ;;  %s2019_s17 = inlined_call_operand.vmem [shape: f32[1,8], index: 17, kind: input, shape index: {}]   ;;  %s2020_s18 = inlined_call_operand.vmem [shape: bf16[8,8], index: 18, kind: input, shape index: {}]   ;;  %s2021_s19 = inlined_call_operand.vmem [shape: f32[1,8], index: 19, kind: input, shape index: {}]   ;;  %s2022_s20 = inlined_call_operand.vmem [shape: bf16[64,8], index: 20, kind: input, shape index: {}]   ;;  %s2023_s21 = inlined_call_operand.vmem [shape: bf16[64,64], index: 21, kind: input, shape index: {}]   ;;  %s2024_s22 = inlined_call_operand.vmem [shape: bf16[2,64,8], index: 22, kind: output, shape index: {}]  }
   0x1   :  { %2029 = sst [smem:[#allocation2_spill]] %s2002_s0 }
   0x2   :  { %2030 = sst [smem:[#allocation3_spill]] %s2003_s1 }
   0x3   :  { %2031 = sst [smem:[#allocation4_spill]] %s2004_s2 }
   0x4   :  { %2032 = sst [smem:[#allocation5_spill]] %s2005_s3  ;;  %s1737_s3 = smov 0  }
   0x5   :  { %2033 = sst [smem:[#allocation6_spill]] %s2006_s4 }
   0x6   :  { %2034 = sst [smem:[#allocation7_spill]] %s2007_s5 }
   0x7   :  { %2035 = sst [smem:[#allocation8_spill]] %s2008_s6 }
   0x8 LB: > { %s1446_s28 = sadd.s32 4294967295, %s1619_s3   ;;  %p1450_p0 = scmp.ge.s32.totalorder %s1619_s3, 1  ;;  %s1619_s3 = sphi %s1737_s3, %s32_s3  }
   0x9   : > { %p620_p1 = scmp.lt.s32.totalorder %s1619_s3, 3 }
   0xb   : > { %p621_p2 = pnand %p1450_p0, %p620_p1 }
   0xc   : > { %s2036_s4 = sld [smem:[#allocation6_spill]] (!%p621_p2)  ;;  %p685_p3 = scmp.lt.s32.totalorder (!%p621_p2), %s1446_s28, 1 }
   0xd   : > { %624 = sbr.rel (%p621_p2) target bundleno = 1362 (0x552), region = 108  ;;  %s2037_s24 = sld [smem:[#allocation3_spill]] (!%p621_p2) }
   0xe   : > { %s2038_s0 = sld [smem:[#allocation7_spill]] (!%p621_p2) }
   0xf   : > { %s2039_s2 = sld [smem:[#allocation2_spill]] (!%p621_p2) }
  0x10   : > { %s2040_s1 = sld [smem:[#allocation4_spill]] (!%p621_p2) }
  0x11   : > { %s2041_s26 = sld [smem:[#allocation8_spill]] (!%p621_p2) }
  0x12   : > { %v1516_v0 = vld [vmem:[%s2036_s4 + $0x8] sm:$0xff]  ;;  %v1515_v1 = vld [vmem:[%s2036_s4] sm:$0xff]  ;;  %s2045_s28 = smov (!%p685_p3, %s1446_s28), 1  ;;  %vm718_vm0 = vcmask 261120   ;;  %vm737_vm1 = vcmask 57344   ;;  %v1621_v11 = vmov 8.0  }
  0x13   : > { %728 = vmatpush.bf16.msra.mxu0 %v1516_v0  ;;  %s692_s6 = scalar_lea.vmem %s2037_s24, %s2045_s28  ;;  %v1518_v4 = vld [vmem:[%s2010_s8 + $0x8] sm:$0xff]  ;;  %v1517_v5 = vld [vmem:[%s2010_s8] sm:$0xff]  ;;  %1575 = vrcp.f32 %v1621_v11  ;;  %vm887_vm3 = vcmask 1043456   ;;  %vm874_vm4 = vcmask 64512   ;;  %s2042_s23 = sld [smem:[#allocation5_spill]]  ;;  %vm1085_vm11 = vcmask 523264  }
  0x14   : > { %v699_v2 = vld [vmem:[%s692_s6] sm:$0x1]  ;;  %792 = vmatpush.bf16.msra.mxu1 %v1518_v4  ;;  %s2028_s6 = sshll.u32 %s2045_s28, 5  ;;  %s2043_s29 = sshll.u32 %s2045_s28, 5  ;;  %vm1373_vm12 = vcmask 60416  }
  0x15   : > { %v700_v3 = vpack.c.bf16 %v699_v2, %v699_v2  ;;  %v705_v6 = vld [vmem:[%s2038_s0] sm:$0x1]  ;;  %s1791_s27 = scalar_lea.vmem %s2039_s2, %s2028_s6  ;;  %s1981_s5 = scalar_lea.vmem %s2024_s22, %s2043_s29 }
  0x16   : > { %v773_v15 = vld [vmem:[%s2011_s9] sm:$0x1]  ;;  %v850_v44 = vld [vmem:[%s2040_s1 + $0x8] sm:$0xff]  ;;  %v851_v46 = vld [vmem:[%s2040_s1 + $0x10] sm:$0xff] }
  0x17   : > { %729 = vmatpush.bf16.msra.mxu0 %v1515_v1  ;;  %v921_v29 = vld [vmem:[%s2015_s13] sm:$0xf]  ;;  %v1555_v45 = vld [vmem:[%s1791_s27 + $0x8] sm:$0xff]   ;;  %v852_v49 = vld [vmem:[%s2040_s1 + $0x18] sm:$0xff] }
  0x18   : > { %793 = vmatpush.bf16.msra.mxu1 %v1517_v5  ;;  %v930_v31 = vsel %vm887_vm3, %v921_v29, 0  ;;  %v869_v38 = vld [vmem:[%s2014_s12] sm:$0xf]  ;;  %v1529_v47 = vunpack.c.l.bf16 %v1555_v45  ;;  %v1530_v48 = vunpack.c.h.bf16 %v1555_v45  ;;  %v1556_v58 = vld [vmem:[%s1791_s27 + $0x10] sm:$0xff]   ;;  %v854_v0 = vld [vmem:[%s2040_s1 + $0x28] sm:$0xff] }
  0x19   : > { %v1576_v12 = vpop.eup %1575  ;;  %939 = vmatpush.bf16.msra.mxu3 %v930_v31  ;;  %v1524_v39 = vld [vmem:[%s1791_s27] sm:$0xff]   ;;  %v889_v41 = vsel %vm887_vm3, %v869_v38, 0  ;;  %v1533_v60 = vunpack.c.l.bf16 %v1556_v58  ;;  %v1534_v61 = vunpack.c.h.bf16 %v1556_v58 }
  0x1a   : > { %1463 = vmatmul.msk.bf16.vlgmr.msra.gmra.mxu0 %vm718_vm0, %v700_v3  ;;  %v742_v13 = vmul.f32 8.0, %v1576_v12  ;;  %vm746_vm2 = vweird.f32 %v1576_v12  ;;  %v849_v40 = vld [vmem:[%s2040_s1] sm:$0xff]  ;;  %v1525_v42 = vunpack.c.l.bf16 %v1524_v39  ;;  %v1526_v43 = vunpack.c.h.bf16 %v1524_v39  ;;  %1561 = vmatpush.bf16.msra.mxu2 %v889_v41 }
  0x1b   : > { %1472 = vmatmul.msk.bf16.vlgmr.msra.gmra.mxu1 %vm718_vm0, %v700_v3  ;;  %v859_v52 = vadd.f32 %v1529_v47, %v851_v46  ;;  %v860_v53 = vadd.f32 %v1530_v48, %v852_v49  ;;  %v853_v63 = vld [vmem:[%s2040_s1 + $0x20] sm:$0xff]  ;;  %v862_v3 = vadd.f32 %v1534_v61, %v854_v0 }
  0x1c   : > { %v743_v14 = vsub.f32 1.0, %v742_v13  ;;  %898 = vmatpush.bf16.msrb.mxu1 %v889_v41  ;;  %v857_v50 = vadd.f32 %v1525_v42, %v849_v40  ;;  %v858_v51 = vadd.f32 %v1526_v43, %v850_v44  ;;  %v861_v2 = vadd.f32 %v1533_v60, %v853_v63  ;;  %v826_v13 = vld [vmem:[%s2042_s23 + $0x8] sm:$0xff]  ;;  %v799_v39 = vld [vmem:[%s2012_s10] sm:$0x1] }
  0x1d   : > { %v866_v55 = vpack.c.bf16 %v860_v53, %v859_v52  ;;  %v947_v42 = vld [vmem:[%s2016_s14] sm:$0xf]  ;;  %v1862_v52 = vld [vmem:[%s2022_s20 + $0x18] sm:$0xff]  }
  0x1e   : > { %v744_v16 = vmul.f32 %v1576_v12, %v743_v14  ;;  %v865_v54 = vpack.c.bf16 %v858_v51, %v857_v50  ;;  %v1557_v14 = vld [vmem:[%s1791_s27 + $0x18] sm:$0xff]   ;;  %v956_v44 = vsel %vm887_vm3, %v947_v42, 0  ;;  %v1571_v47 = vld [vmem:[%s2018_s16] ss:$0 sm:$0xff] }
  0x1f   : > { %1474 = vmatmul.msk.bf16.vlgmr.msra.gmra.mxu2 %vm874_vm4, %v866_v55  ;;  %965 = vmatpush.bf16.msrb.mxu3 %v956_v44  ;;  %v1573_v42 = vld [vmem:[%s2019_s17] ss:$0 sm:$0xff] }
  0x20   : > { %v745_v19 = vadd.f32 %v1576_v12, %v744_v16 }
  0x22   : > { %v1771_v21 = vsel %vm746_vm2, %v1576_v12, %v745_v19  ;;  %v825_v12 = vld [vmem:[%s2042_s23] sm:$0xff]  ;;  %v1538_v19 = vunpack.c.h.bf16 %v1557_v14 }
  0x2b   : > { %1473 = vmatmul.msk.bf16.vlgmr.msrb.gmra.mxu1 %vm874_vm4, %v865_v54 }
  0x97   : > { %v731_v7 = vpop.f32.mrf.mxu0 }
  0x98   : > { %v732_v8 = vadd.f32 %v731_v7, %v705_v6  ;;  %v795_v17 = vpop.f32.mrf.mxu1  ;;  %v735_v6 = vld [vmem:[%s2041_s26] sm:$0x1] }
  0x99   : > { %v796_v18 = vadd.f32 %v795_v17, %v773_v15 }
  0x9a   : > { %v738_v9 = vsel %vm737_vm1, %v732_v8, 0.0 }
  0x9b   : > { %739 = vadd.xlane.f32.xlu0 %v738_v9  ;;  %v801_v20 = vsel %vm737_vm1, %v796_v18, 0.0  ;;  %v736_v9 = vld [vmem:[%s2009_s7] sm:$0x1] }
  0x9c   : > { %802 = vadd.xlane.f32.xlu1 %v801_v20  ;;  %v855_v20 = vld [vmem:[%s2040_s1 + $0x30] sm:$0xff] }
  0x9f   : > { %v733_v10 = vpop.f32.mrf.mxu0 }
  0xa0   : > { %v797_v22 = vpop.f32.mrf.mxu1 }
  0xa1   : > { %v856_v22 = vld [vmem:[%s2040_s1 + $0x38] sm:$0xff] }
 0x10e   : > { %v740_v23 = vpop.xlane.xlu0 %739 }
 0x10f   : > { %v748_v24 = vmul.f32 %v1771_v21, %v740_v23  ;;  %v803_v28 = vpop.xlane.xlu1 %802 }
 0x110   : > { %v804_v30 = vmul.f32 %v803_v28, %v1771_v21 }
 0x111   : > { %v749_v25 = vsub.f32 %v732_v8, %v748_v24  ;;  %v867_v8 = vpack.c.bf16 %v862_v3, %v861_v2 }
 0x112   : > { %v1780_v32 = vsub.f32 %v796_v18, %v804_v30  ;;  %v1537_v18 = vunpack.c.l.bf16 %v1557_v14  ;;  %v900_v14 = vpop.f32.mrf.mxu1 }
 0x113   : > { %v750_v26 = vmul.f32 %v749_v25, %v749_v25  ;;  %1475 = vmatmul.msk.bf16.gmra.mxu2 %vm874_vm4, %v867_v8 }
 0x114   : > { %v806_v33 = vmul.f32 %v1780_v32, %v1780_v32  ;;  %v863_v24 = vadd.f32 %v1537_v18, %v855_v20  ;;  %v905_v20 = vpop.f32.mrf.mxu2 }
 0x115   : > { %v751_v27 = vsel %vm737_vm1, %v750_v26, 0.0 }
 0x116   : > { %752 = vadd.xlane.f32.xlu0 %v751_v27  ;;  %v807_v34 = vsel %vm737_vm1, %v806_v33, 0.0 }
 0x117   : > { %808 = vadd.xlane.f32.xlu1 %v807_v34 }
 0x189   : > { %v753_v35 = vpop.xlane.xlu0 %752 }
 0x18a   : > { %v754_v36 = vmul.f32 %v753_v35, %v1771_v21  ;;  %v809_v27 = vpop.xlane.xlu1 %808 }
 0x18b   : > { %v810_v28 = vmul.f32 %v809_v27, %v1771_v21  ;;  %v800_v21 = vld [vmem:[%s2013_s11] sm:$0x1] }
 0x18c   : > { %v755_v37 = vadd.f32 1e-05, %v754_v36 }
 0x18d   : > { %v811_v29 = vadd.f32 1e-05, %v810_v28  ;;  %v907_v28 = vpop.f32.mrf.mxu2 }
 0x18e   : > { %1577 = vrsqrt.f32 %v755_v37  ;;  %vm762_vm6 = vweird.f32 %v755_v37 }
 0x18f   : > { %1579 = vrsqrt.f32 %v811_v29  ;;  %vm818_vm8 = vweird.f32 %v811_v29 }
 0x194   : > { %v1578_v56 = vpop.eup %1577 }
 0x195   : > { %v757_v57 = vmul.f32 %v1578_v56, %v755_v37  ;;  %vm763_vm5 = vweird.f32 %v1578_v56  ;;  %v1580_v30 = vpop.eup %1579 }
 0x196   : > { %vm764_vm7 = vmor %vm762_vm6, %vm763_vm5  ;;  %v813_v31 = vmul.f32 %v1580_v30, %v811_v29  ;;  %vm819_vm9 = vweird.f32 %v1580_v30  ;;  %v910_v29 = vpop.f32.mrf.mxu2 }
 0x197   : > { %v758_v59 = vmul.f32 %v1578_v56, %v757_v57  ;;  %vm820_vm10 = vmor %vm818_vm8, %vm819_vm9  ;;  %v1554_v57 = vunpack.c.h.bf16 %v1862_v52 }
 0x198   : > { %v814_v33 = vmul.f32 %v1580_v30, %v813_v31 }
 0x199   : > { %v759_v62 = vmul.f32 0.5, %v758_v59  ;;  %v1869_v59 = vld [vmem:[%s2022_s20 + $0x10] sm:$0xff]  }
 0x19a   : > { %v815_v34 = vmul.f32 0.5, %v814_v33  ;;  %v1549_v0 = vunpack.c.l.bf16 %v1869_v59 }
 0x19b   : > { %v760_v1 = vsub.f32 1.5, %v759_v62  ;;  %v1550_v62 = vunpack.c.h.bf16 %v1869_v59 }
 0x19c   : > { %v816_v35 = vsub.f32 1.5, %v815_v34 }
 0x19d   : > { %v761_v4 = vmul.f32 %v1578_v56, %v760_v1 }
 0x19e   : > { %v817_v36 = vmul.f32 %v1580_v30, %v816_v35  ;;  %v912_v34 = vpop.f32.mrf.mxu2 }
 0x19f   : > { %v765_v5 = vsel %vm764_vm7, %v1578_v56, %v761_v4  ;;  %v1553_v56 = vunpack.c.l.bf16 %v1862_v52  ;;  %v1883_v4 = vld [vmem:[%s2022_s20 + $0x8] sm:$0xff]  }
 0x1a0   : > { %v766_v7 = vmul.f32 %v765_v5, %v749_v25  ;;  %v864_v25 = vadd.f32 %v1538_v19, %v856_v22  ;;  %v821_v37 = vsel %vm820_vm10, %v1580_v30, %v817_v36  ;;  %v1572_v22 = vld [vmem:[%s2017_s15] ss:$0 sm:$0xff] }
 0x1a1   : > { %v822_v38 = vmul.f32 %v821_v37, %v1780_v32  ;;  %v906_v30 = vadd.f32 %v1572_v22, %v905_v20  ;;  %v908_v31 = vadd.f32 %v1572_v22, %v907_v28  ;;  %v911_v35 = vadd.f32 %v1572_v22, %v910_v29 }
 0x1a2   : > { %v767_v10 = vmul.f32 %v766_v7, %v735_v6  ;;  %v868_v26 = vpack.c.bf16 %v864_v25, %v863_v24  ;;  %v1546_v6 = vunpack.c.h.bf16 %v1883_v4  ;;  %v1545_v7 = vunpack.c.l.bf16 %v1883_v4 }
 0x1a3   : > { %v823_v40 = vmul.f32 %v822_v38, %v799_v39  ;;  %v901_v25 = vadd.f32 %v1572_v22, %v900_v14  ;;  %v1021_v33 = vpack.c.bf16 %v908_v31, %v906_v30  ;;  %v913_v36 = vadd.f32 %v1572_v22, %v912_v34 }
 0x1a4   : > { %v768_v11 = vadd.f32 %v767_v10, %v736_v9  ;;  %1476 = vmatmul.msk.bf16.gmra.mxu2 %vm874_vm4, %v868_v26 }
 0x1a5   : > { %v824_v41 = vadd.f32 %v823_v40, %v800_v21  ;;  %v1022_v38 = vpack.c.bf16 %v913_v36, %v911_v35 }
 0x1a6   : > { %v827_v15 = vperm.slane %v768_v11, 0  ;;  %v1540_v11 = vld [vmem:[%s2022_s20] sm:$0xff]  }
 0x1a7   : > { %v830_v43 = vperm.slane %v824_v41, 0 }
 0x1a8   : > { %v828_v16 = vadd.f32 %v827_v15, %v825_v12  ;;  %v829_v17 = vadd.f32 %v827_v15, %v826_v13  ;;  %v1541_v15 = vunpack.c.l.bf16 %v1540_v11 }
 0x1a9   : > { %v831_v45 = vadd.f32 %v830_v43, %v825_v12  ;;  %v832_v32 = vadd.f32 %v830_v43, %v826_v13  ;;  %v1542_v13 = vunpack.c.h.bf16 %v1540_v11 }
 0x1aa   : > { %v920_v23 = vpack.c.bf16 %v829_v17, %v828_v16 }
 0x1ab   : > { %v946_v46 = vpack.c.bf16 %v832_v32, %v831_v45 }
 0x1ac   : > { %1477 = vmatmul.msk.bf16.vlgmr.msra.gmra.mxu3 %vm874_vm4, %v920_v23  ;;  %v902_v23 = vpop.f32.mrf.mxu1 }
 0x1ad   : > { %v903_v26 = vadd.f32 %v1572_v22, %v902_v23  ;;  %v1522_v23 = vld [vmem:[%s2023_s21 + $0x18] sm:$0xff] }
 0x1ae   : > { %1210 = vmatpush.bf16.msra.mxu1 %v1522_v23 }
 0x1af   : > { %v1020_v27 = vpack.c.bf16 %v903_v26, %v901_v25  ;;  %v1520_v25 = vld [vmem:[%s2023_s21 + $0x8] sm:$0xff]  ;;  %v1519_v26 = vld [vmem:[%s2023_s21] sm:$0xff] }
 0x1bc   : > { %1478 = vmatmul.msk.bf16.vlgmr.msrb.gmra.mxu3 %vm874_vm4, %v946_v46 }
 0x227   : > { %v915_v37 = vpop.f32.mrf.mxu2 }
 0x228   : > { %v916_v40 = vadd.f32 %v1572_v22, %v915_v37 }
 0x22f   : > { %v941_v48 = vpop.f32.mrf.mxu3  ;;  %v917_v39 = vpop.f32.mrf.mxu2 }
 0x230   : > { %v942_v49 = vadd.f32 %v1571_v47, %v941_v48  ;;  %v918_v21 = vadd.f32 %v1572_v22, %v917_v39 }
 0x232   : > { %v980_v50 = vpack.c.bf16 %v942_v49, %v942_v49  ;;  %v1023_v41 = vpack.c.bf16 %v918_v21, %v916_v40 }
 0x234   : > { %v982_v54 = vunpack.c.l.bf16 %v980_v50 }
 0x236   : > { %v998_v60 = vmul.f32 %v1553_v56, %v982_v54  ;;  %v996_v3 = vmul.f32 %v1549_v0, %v982_v54  ;;  %v994_v10 = vmul.f32 %v1545_v7, %v982_v54  ;;  %v992_v18 = vmul.f32 %v1541_v15, %v982_v54 }
 0x237   : > { %v943_v51 = vpop.f32.mrf.mxu3 }
 0x238   : > { %v944_v53 = vadd.f32 %v1571_v47, %v943_v51 }
 0x23a   : > { %v981_v55 = vpack.c.bf16 %v944_v53, %v944_v53 }
 0x23c   : > { %v983_v58 = vunpack.c.l.bf16 %v981_v55 }
 0x23e   : > { %v999_v61 = vmul.f32 %v1554_v57, %v983_v58  ;;  %v997_v2 = vmul.f32 %v1550_v62, %v983_v58  ;;  %v995_v9 = vmul.f32 %v1546_v6, %v983_v58  ;;  %v993_v17 = vmul.f32 %v1542_v13, %v983_v58 }
 0x23f   : > { %v967_v43 = vpop.f32.mrf.mxu3 }
 0x240   : > { %v1003_v63 = vpack.c.bf16 %v999_v61, %v998_v60  ;;  %v1002_v5 = vpack.c.bf16 %v997_v2, %v996_v3  ;;  %v1001_v12 = vpack.c.bf16 %v995_v9, %v994_v10  ;;  %v1000_v19 = vpack.c.bf16 %v993_v17, %v992_v18 }
 0x241   : > { %v968_v44 = vadd.f32 %v1573_v42, %v967_v43 }
 0x242   : > { %v1046_v1 = vsel %vm874_vm4, %v1003_v63, 0  ;;  %v1043_v8 = vsel %vm874_vm4, %v1002_v5, 0  ;;  %v1040_v16 = vsel %vm874_vm4, %v1001_v12, 0  ;;  %v1037_v24 = vsel %vm874_vm4, %v1000_v19, 0 }
 0x243   : > { %1052 = vmatpush.bf16.xpose.msrb.mxu0 %v1046_v1  ;;  %v1004_v45 = vpack.c.bf16 %v968_v44, %v968_v44 }
 0x245   : > { %v1006_v46 = vunpack.c.l.bf16 %v1004_v45 }
 0x247   : > { %v969_v32 = vpop.f32.mrf.mxu3  ;;  %v1014_v50 = vmul.f32 %v1553_v56, %v1006_v46  ;;  %v1012_v53 = vmul.f32 %v1549_v0, %v1006_v46  ;;  %v1010_v60 = vmul.f32 %v1545_v7, %v1006_v46  ;;  %v1008_v1 = vmul.f32 %v1541_v15, %v1006_v46 }
 0x248   : > { %v970_v47 = vadd.f32 %v1573_v42, %v969_v32 }
 0x24a   : > { %v1005_v48 = vpack.c.bf16 %v970_v47, %v970_v47 }
 0x24b   : > { %1053 = vmatpush.bf16.xpose.msrb.mxu0 %v1043_v8 }
 0x24c   : > { %v1007_v49 = vunpack.c.l.bf16 %v1005_v48 }
 0x24e   : > { %v1015_v51 = vmul.f32 %v1554_v57, %v1007_v49  ;;  %v1013_v54 = vmul.f32 %v1550_v62, %v1007_v49  ;;  %v1011_v61 = vmul.f32 %v1546_v6, %v1007_v49  ;;  %v1009_v2 = vmul.f32 %v1542_v13, %v1007_v49 }
 0x250   : > { %v1019_v55 = vpack.c.bf16 %v1015_v51, %v1014_v50  ;;  %v1018_v58 = vpack.c.bf16 %v1013_v54, %v1012_v53  ;;  %v1017_v63 = vpack.c.bf16 %v1011_v61, %v1010_v60  ;;  %v1016_v3 = vpack.c.bf16 %v1009_v2, %v1008_v1 }
 0x252   : > { %1287 = vmatpush.bf16.msra.mxu3 %v1019_v55 }
 0x253   : > { %1054 = vmatpush.bf16.xpose.msrb.mxu0 %v1040_v16 }
 0x256   : > { %1288 = vmatpush.bf16.msra.mxu3 %v1018_v58 }
 0x25a   : > { %1289 = vmatpush.bf16.msra.mxu3 %v1017_v63 }
 0x25b   : > { %1055 = vmatpush.bf16.xpose.msrb.mxu0 %v1037_v24  ;;  %v1521_v24 = vld [vmem:[%s2023_s21 + $0x10] sm:$0xff] }
 0x25c   : > { %1211 = vmatpush.bf16.msra.mxu1 %v1521_v24 }
 0x25e   : > { %1290 = vmatpush.bf16.msra.mxu3 %v1016_v3 }
 0x260   : > { %1212 = vmatpush.bf16.msra.mxu1 %v1520_v25 }
 0x262   : > { %1479 = vmatmul.msk.bf16.vlgmr.msrb.gmra.mxu0 %vm874_vm4, %v1020_v27 }
 0x264   : > { %1213 = vmatpush.bf16.msra.mxu1 %v1519_v26 }
 0x272   : > { %1480 = vmatmul.msk.bf16.gmra.mxu0 %vm874_vm4, %v1021_v33 }
 0x282   : > { %1481 = vmatmul.msk.bf16.gmra.mxu0 %vm874_vm4, %v1022_v38 }
 0x292   : > { %1482 = vmatmul.msk.bf16.gmra.mxu0 %vm874_vm4, %v1023_v41 }
 0x2df   : > { %v1057_v56 = vpop.f32.mrf.mxu0 }
 0x2e0   : > { %v1077_v52 = vmul.f32 0.70710677, %v1057_v56 }
 0x2e2   : > { %v1086_v57 = vsel %vm1085_vm11, %v1077_v52, -inf }
 0x2e3   : > { %1087 = vmax.xlane.f32.xlu2 %v1086_v57 }
 0x2e7   : > { %v1059_v59 = vpop.f32.mrf.mxu0 }
 0x2e8   : > { %v1078_v62 = vmul.f32 0.70710677, %v1059_v59 }
 0x2ea   : > { %v1089_v0 = vsel %vm1085_vm11, %v1078_v62, -inf }
 0x2eb   : > { %1090 = vmax.xlane.f32.xlu2 %v1089_v0 }
 0x2ef   : > { %v1062_v4 = vpop.f32.mrf.mxu0 }
 0x2f0   : > { %v1079_v5 = vmul.f32 0.70710677, %v1062_v4 }
 0x2f2   : > { %v1092_v6 = vsel %vm1085_vm11, %v1079_v5, -inf }
 0x2f3   : > { %1093 = vmax.xlane.f32.xlu0 %v1092_v6 }
 0x2f7   : > { %v1064_v7 = vpop.f32.mrf.mxu0 }
 0x2f8   : > { %v1080_v8 = vmul.f32 0.70710677, %v1064_v7 }
 0x2fa   : > { %v1095_v9 = vsel %vm1085_vm11, %v1080_v8, -inf }
 0x2fb   : > { %1096 = vmax.xlane.f32.xlu1 %v1095_v9 }
 0x2ff   : > { %v1067_v10 = vpop.f32.mrf.mxu0 }
 0x300   : > { %v1081_v11 = vmul.f32 0.70710677, %v1067_v10 }
 0x302   : > { %v1098_v12 = vsel %vm1085_vm11, %v1081_v11, -inf }
 0x303   : > { %1099 = vmax.xlane.f32.xlu2 %v1098_v12 }
 0x307   : > { %v1069_v13 = vpop.f32.mrf.mxu0 }
 0x308   : > { %v1082_v14 = vmul.f32 0.70710677, %v1069_v13 }
 0x30a   : > { %v1101_v15 = vsel %vm1085_vm11, %v1082_v14, -inf }
 0x30b   : > { %1102 = vmax.xlane.f32.xlu0 %v1101_v15 }
 0x30f   : > { %v1072_v16 = vpop.f32.mrf.mxu0 }
 0x310   : > { %v1083_v17 = vmul.f32 0.70710677, %v1072_v16 }
 0x312   : > { %v1104_v18 = vsel %vm1085_vm11, %v1083_v17, -inf }
 0x313   : > { %1105 = vmax.xlane.f32.xlu1 %v1104_v18 }
 0x317   : > { %v1074_v19 = vpop.f32.mrf.mxu0 }
 0x318   : > { %v1916_v20 = vmul.f32 0.70710677, %v1074_v19 }
 0x31a   : > { %v1107_v22 = vsel %vm1085_vm11, %v1916_v20, -inf }
 0x31b   : > { %1108 = vmax.xlane.f32.xlu2 %v1107_v22 }
 0x356   : > { %v1088_v27 = vpop.xlane.xlu2 %1087 }
 0x357   : > { %v1110_v28 = vsub.f32 %v1077_v52, %v1088_v27 }
 0x359   : > { %v1118_v29 = vmul.f32 1.442695, %v1110_v28 }
 0x35b   : > { %1581 = vpow2.f32 %v1118_v29 }
 0x35e   : > { %v1091_v30 = vpop.xlane.xlu2 %1090 }
 0x35f   : > { %v1111_v31 = vsub.f32 %v1078_v62, %v1091_v30 }
 0x361   : > { %v1120_v33 = vmul.f32 1.442695, %v1111_v31  ;;  %v1582_v34 = vpop.eup %1581 }
 0x362   : > { %v1932_v37 = vpack.c.bf16 %v1582_v34, %v1582_v34 }
 0x363   : > { %1583 = vpow2.f32 %v1120_v33 }
 0x364   : > { %v1158_v21 = vunpack.c.l.b16 %v1932_v37  ;;  %v1243_v19 = vunpack.c.l.bf16 %v1932_v37 }
 0x366   : > { %v1094_v35 = vpop.xlane.xlu0 %1093 }
 0x367   : > { %v1112_v36 = vsub.f32 %v1079_v5, %v1094_v35 }
 0x369   : > { %v1584_v38 = vpop.eup %1583  ;;  %v1122_v40 = vmul.f32 1.442695, %v1112_v36 }
 0x36a   : > { %v1934_v39 = vpack.c.bf16 %v1584_v38, %v1584_v38 }
 0x36b   : > { %1585 = vpow2.f32 %v1122_v40  ;;  %v1316_v40 = vld [vmem:[%s2020_s18] sm:$0xf] }
 0x36c   : > { %v1159_v41 = vunpack.c.l.b16 %v1934_v39 }
 0x36e   : > { %v1166_v42 = vpack.c.b16 %v1159_v41, %v1158_v21  ;;  %v1097_v43 = vpop.xlane.xlu1 %1096  ;;  %v1334_v21 = vsel %vm887_vm3, %v1316_v40, 0 }
 0x36f   : > { %v1113_v44 = vsub.f32 %v1080_v8, %v1097_v43  ;;  %1343 = vmatpush.bf16.msrb.mxu2 %v1334_v21 }
 0x370   : > { %1499 = vmatmul.msk.bf16.vlgmr.msra.gmra.mxu1 %vm1085_vm11, %v1166_v42 }
 0x371   : > { %v1124_v45 = vmul.f32 1.442695, %v1113_v44  ;;  %v1586_v32 = vpop.eup %1585 }
 0x372   : > { %v1939_v48 = vpack.c.bf16 %v1586_v32, %v1586_v32 }
 0x373   : > { %1587 = vpow2.f32 %v1124_v45 }
 0x374   : > { %v1160_v53 = vunpack.c.l.b16 %v1939_v48  ;;  %v1245_v31 = vunpack.c.l.bf16 %v1939_v48 }
 0x376   : > { %v1100_v46 = vpop.xlane.xlu2 %1099 }
 0x377   : > { %v1114_v47 = vsub.f32 %v1081_v11, %v1100_v46 }
 0x379   : > { %v1588_v49 = vpop.eup %1587  ;;  %v1126_v51 = vmul.f32 1.442695, %v1114_v47 }
 0x37a   : > { %v1137_v50 = vpack.c.bf16 %v1588_v49, %v1588_v49 }
 0x37b   : > { %1589 = vpow2.f32 %v1126_v51 }
 0x37c   : > { %v1161_v54 = vunpack.c.l.b16 %v1137_v50  ;;  %v1246_v33 = vunpack.c.l.bf16 %v1137_v50 }
 0x37e   : > { %v1103_v55 = vpop.xlane.xlu0 %1102  ;;  %v1167_v58 = vpack.c.b16 %v1161_v54, %v1160_v53 }
 0x37f   : > { %v1115_v60 = vsub.f32 %v1082_v14, %v1103_v55 }
 0x380   : > { %1500 = vmatmul.msk.bf16.gmra.mxu1 %vm1085_vm11, %v1167_v58 }
 0x381   : > { %v1128_v61 = vmul.f32 1.442695, %v1115_v60  ;;  %v1590_v63 = vpop.eup %1589 }
 0x382   : > { %v1943_v3 = vpack.c.bf16 %v1590_v63, %v1590_v63 }
 0x383   : > { %1591 = vpow2.f32 %v1128_v61 }
 0x384   : > { %v1162_v59 = vunpack.c.l.b16 %v1943_v3  ;;  %v1247_v44 = vunpack.c.l.bf16 %v1943_v3 }
 0x386   : > { %v1106_v1 = vpop.xlane.xlu1 %1105 }
 0x387   : > { %v1116_v2 = vsub.f32 %v1083_v17, %v1106_v1 }
 0x389   : > { %v1592_v56 = vpop.eup %1591  ;;  %v1130_v57 = vmul.f32 1.442695, %v1116_v2 }
 0x38a   : > { %v1945_v52 = vpack.c.bf16 %v1592_v56, %v1592_v56 }
 0x38b   : > { %1593 = vpow2.f32 %v1130_v57 }
 0x38c   : > { %v1163_v62 = vunpack.c.l.b16 %v1945_v52  ;;  %v1248_v45 = vunpack.c.l.bf16 %v1945_v52 }
 0x38e   : > { %v1109_v0 = vpop.xlane.xlu2 %1108  ;;  %v1168_v4 = vpack.c.b16 %v1163_v62, %v1162_v59 }
 0x38f   : > { %v1117_v5 = vsub.f32 %v1916_v20, %v1109_v0  ;;  %v1244_v20 = vunpack.c.l.bf16 %v1934_v39 }
 0x390   : > { %1501 = vmatmul.msk.bf16.gmra.mxu1 %vm1085_vm11, %v1168_v4 }
 0x391   : > { %v1132_v6 = vmul.f32 1.442695, %v1117_v5  ;;  %v1594_v7 = vpop.eup %1593 }
 0x392   : > { %v1951_v8 = vpack.c.bf16 %v1594_v7, %v1594_v7 }
 0x393   : > { %1595 = vpow2.f32 %v1132_v6 }
 0x394   : > { %v1164_v11 = vunpack.c.l.b16 %v1951_v8  ;;  %v1249_v55 = vunpack.c.l.bf16 %v1951_v8  ;;  %v1574_v8 = vld [vmem:[%s2021_s19] ss:$0 sm:$0xff] }
 0x399   : > { %v1596_v9 = vpop.eup %1595 }
 0x39a   : > { %v1141_v10 = vpack.c.bf16 %v1596_v9, %v1596_v9 }
 0x39c   : > { %v1165_v12 = vunpack.c.l.b16 %v1141_v10  ;;  %v1250_v58 = vunpack.c.l.bf16 %v1141_v10 }
 0x39e   : > { %v1169_v13 = vpack.c.b16 %v1165_v12, %v1164_v11 }
 0x3a0   : > { %1502 = vmatmul.msk.bf16.gmra.mxu1 %vm1085_vm11, %v1169_v13 }
 0x3ed   : > { %v1215_v14 = vpop.f32.mrf.mxu1 }
 0x3ee   : > { %v1235_v15 = vmax.f32 %v1215_v14, 1e-30 }
 0x3f0   : > { %1597 = vrcp.f32 %v1235_v15 }
 0x3f5   : > { %v1217_v16 = vpop.f32.mrf.mxu1 }
 0x3f6   : > { %v1236_v17 = vmax.f32 %v1217_v16, 1e-30  ;;  %v1598_v18 = vpop.eup %1597 }
 0x3f7   : > { %v1259_v24 = vmul.f32 %v1598_v18, %v1243_v19 }
 0x3f8   : > { %1599 = vrcp.f32 %v1236_v17 }
 0x3fd   : > { %v1220_v22 = vpop.f32.mrf.mxu1 }
 0x3fe   : > { %v1600_v23 = vpop.eup %1599  ;;  %v1237_v27 = vmax.f32 %v1220_v22, 1e-30 }
 0x3ff   : > { %v1260_v25 = vmul.f32 %v1600_v23, %v1244_v20 }
 0x400   : > { %1601 = vrcp.f32 %v1237_v27 }
 0x401   : > { %v1267_v26 = vpack.c.bf16 %v1260_v25, %v1259_v24 }
 0x403   : > { %1503 = vmatmul.msk.bf16.vlgmr.msra.gmra.mxu3 %vm1085_vm11, %v1267_v26 }
 0x405   : > { %v1222_v28 = vpop.f32.mrf.mxu1 }
 0x406   : > { %v1238_v29 = vmax.f32 %v1222_v28, 1e-30  ;;  %v1602_v30 = vpop.eup %1601 }
 0x407   : > { %v1261_v36 = vmul.f32 %v1602_v30, %v1245_v31 }
 0x408   : > { %1603 = vrcp.f32 %v1238_v29 }
 0x40d   : > { %v1225_v34 = vpop.f32.mrf.mxu1 }
 0x40e   : > { %v1604_v35 = vpop.eup %1603  ;;  %v1239_v39 = vmax.f32 %v1225_v34, 1e-30 }
 0x40f   : > { %v1262_v37 = vmul.f32 %v1604_v35, %v1246_v33 }
 0x410   : > { %1605 = vrcp.f32 %v1239_v39 }
 0x411   : > { %v1268_v38 = vpack.c.bf16 %v1262_v37, %v1261_v36 }
 0x413   : > { %1504 = vmatmul.msk.bf16.gmra.mxu3 %vm1085_vm11, %v1268_v38 }
 0x415   : > { %v1227_v41 = vpop.f32.mrf.mxu1 }
 0x416   : > { %v1240_v42 = vmax.f32 %v1227_v41, 1e-30  ;;  %v1606_v43 = vpop.eup %1605 }
 0x417   : > { %v1263_v47 = vmul.f32 %v1606_v43, %v1247_v44 }
 0x418   : > { %1607 = vrcp.f32 %v1240_v42 }
 0x41d   : > { %v1230_v32 = vpop.f32.mrf.mxu1 }
 0x41e   : > { %v1608_v46 = vpop.eup %1607  ;;  %v1241_v50 = vmax.f32 %v1230_v32, 1e-30 }
 0x41f   : > { %v1264_v48 = vmul.f32 %v1608_v46, %v1248_v45 }
 0x420   : > { %1609 = vrcp.f32 %v1241_v50 }
 0x421   : > { %v1269_v49 = vpack.c.bf16 %v1264_v48, %v1263_v47 }
 0x423   : > { %1505 = vmatmul.msk.bf16.gmra.mxu3 %vm1085_vm11, %v1269_v49 }
 0x425   : > { %v1232_v51 = vpop.f32.mrf.mxu1 }
 0x426   : > { %v1242_v53 = vmax.f32 %v1232_v51, 1e-30  ;;  %v1610_v54 = vpop.eup %1609 }
 0x427   : > { %v1265_v61 = vmul.f32 %v1610_v54, %v1249_v55 }
 0x428   : > { %1611 = vrcp.f32 %v1242_v53 }
 0x42e   : > { %v1612_v60 = vpop.eup %1611 }
 0x42f   : > { %v1266_v63 = vmul.f32 %v1612_v60, %v1250_v58 }
 0x431   : > { %v1270_v1 = vpack.c.bf16 %v1266_v63, %v1265_v61 }
 0x433   : > { %1506 = vmatmul.msk.bf16.gmra.mxu3 %vm1085_vm11, %v1270_v1 }
 0x486   : > { %v1292_v2 = vpop.f32.mrf.mxu3 }
 0x48e   : > { %v1294_v3 = vpop.f32.mrf.mxu3 }
 0x48f   : > { %v1312_v56 = vpack.c.bf16 %v1294_v3, %v1292_v2 }
 0x491   : > { %1507 = vmatmul.msk.bf16.vlgmr.msrb.gmra.mxu2 %vm874_vm4, %v1312_v56 }
 0x496   : > { %v1297_v52 = vpop.f32.mrf.mxu3 }
 0x49e   : > { %v1299_v57 = vpop.f32.mrf.mxu3 }
 0x49f   : > { %v1313_v59 = vpack.c.bf16 %v1299_v57, %v1297_v52 }
 0x4a1   : > { %1508 = vmatmul.msk.bf16.gmra.mxu2 %vm874_vm4, %v1313_v59 }
 0x4a6   : > { %v1302_v62 = vpop.f32.mrf.mxu3 }
 0x4ae   : > { %v1304_v0 = vpop.f32.mrf.mxu3 }
 0x4af   : > { %v1314_v4 = vpack.c.bf16 %v1304_v0, %v1302_v62 }
 0x4b1   : > { %1509 = vmatmul.msk.bf16.gmra.mxu2 %vm874_vm4, %v1314_v4 }
 0x4b6   : > { %v1307_v5 = vpop.f32.mrf.mxu3 }
 0x4be   : > { %v1309_v6 = vpop.f32.mrf.mxu3 }
 0x4bf   : > { %v1315_v7 = vpack.c.bf16 %v1309_v6, %v1307_v5 }
 0x4c1   : > { %1510 = vmatmul.msk.bf16.gmra.mxu2 %vm874_vm4, %v1315_v7 }
 0x514   : > { %v1345_v9 = vpop.f32.mrf.mxu2 }
 0x515   : > { %v1346_v10 = vadd.f32 %v1574_v8, %v1345_v9 }
 0x517   : > { %v1365_v11 = vpack.c.bf16 %v1346_v10, %v1346_v10 }
 0x519   : > { %1374 = vst.msk [vmem:[%s1981_s5] sm:$0xf] %vm1373_vm12, %v1365_v11 }
 0x51c   : > { %v1347_v12 = vpop.f32.mrf.mxu2 }
 0x51d   : > { %v1348_v13 = vadd.f32 %v1574_v8, %v1347_v12 }
 0x51f   : > { %v1366_v14 = vpack.c.bf16 %v1348_v13, %v1348_v13 }
 0x521   : > { %1375 = vst.msk [vmem:[%s1981_s5 + $0x4] sm:$0xf] %vm1373_vm12, %v1366_v14 }
 0x524   : > { %v1350_v15 = vpop.f32.mrf.mxu2 }
 0x525   : > { %v1351_v16 = vadd.f32 %v1574_v8, %v1350_v15 }
 0x527   : > { %v1367_v17 = vpack.c.bf16 %v1351_v16, %v1351_v16 }
 0x529   : > { %1376 = vst.msk [vmem:[%s1981_s5 + $0x8] sm:$0xf] %vm1373_vm12, %v1367_v17 }
 0x52c   : > { %v1352_v18 = vpop.f32.mrf.mxu2 }
 0x52d   : > { %v1353_v19 = vadd.f32 %v1574_v8, %v1352_v18 }
 0x52f   : > { %v1368_v20 = vpack.c.bf16 %v1353_v19, %v1353_v19 }
 0x531   : > { %1377 = vst.msk [vmem:[%s1981_s5 + $0xc] sm:$0xf] %vm1373_vm12, %v1368_v20 }
 0x534   : > { %v1355_v22 = vpop.f32.mrf.mxu2 }
 0x535   : > { %v1356_v23 = vadd.f32 %v1574_v8, %v1355_v22 }
 0x537   : > { %v1369_v24 = vpack.c.bf16 %v1356_v23, %v1356_v23 }
 0x539   : > { %1378 = vst.msk [vmem:[%s1981_s5 + $0x10] sm:$0xf] %vm1373_vm12, %v1369_v24 }
 0x53c   : > { %v1357_v25 = vpop.f32.mrf.mxu2 }
 0x53d   : > { %v1358_v26 = vadd.f32 %v1574_v8, %v1357_v25 }
 0x53f   : > { %v1370_v27 = vpack.c.bf16 %v1358_v26, %v1358_v26 }
 0x541   : > { %1379 = vst.msk [vmem:[%s1981_s5 + $0x14] sm:$0xf] %vm1373_vm12, %v1370_v27 }
 0x544   : > { %v1360_v28 = vpop.f32.mrf.mxu2 }
 0x545   : > { %v1361_v29 = vadd.f32 %v1574_v8, %v1360_v28 }
 0x547   : > { %v1371_v30 = vpack.c.bf16 %v1361_v29, %v1361_v29 }
 0x549   : > { %1380 = vst.msk [vmem:[%s1981_s5 + $0x18] sm:$0xf] %vm1373_vm12, %v1371_v30 }
 0x54c   : > { %v1362_v31 = vpop.f32.mrf.mxu2 }
 0x54d   : > { %v1363_v33 = vadd.f32 %v1574_v8, %v1362_v31 }
 0x54f   : > { %v1372_v34 = vpack.c.bf16 %v1363_v33, %v1363_v33 }
 0x551   : > { %1381 = vst.msk [vmem:[%s1981_s5 + $0x1c] sm:$0xf] %vm1373_vm12, %v1372_v34 }
 0x552 PF: > { %s32_s3 = sadd.s32 1, %s1619_s3  }
 0x553   : > { %p29_p4 = scmp.ge.s32.totalorder %s32_s3, 4  }
 0x555   :  { %31 = sbr.rel (!%p29_p4) target bundleno = 8 (0x8), region = 141 }

// kernel: mix_img_attention_forward.5
= control target key start
LH: loop header
LB: loop body
LE: loop exit
PB: predicated region body
PF: predicated region fallthrough
CT: control target
= control target key end

     0   :  { %s1384_s0 = inlined_call_operand.vmem [shape: bf16[128,432], index: 0, kind: input, shape index: {}]   ;;  %s1385_s1 = inlined_call_operand.vmem [shape: bf16[432,128], index: 1, kind: input, shape index: {}]   ;;  %s1386_s2 = inlined_call_operand.vmem [shape: f32[1,128], index: 2, kind: input, shape index: {}]   ;;  %s1387_s3 = inlined_call_operand.hbm [shape: f32[128,128], index: 3, kind: output, shape index: {}]  }
   0x1   :  { %v1006_v0 = vld [vmem:[%s1385_s1 + $0x38] sm:$0xff]  ;;  %v1005_v3 = vld [vmem:[%s1385_s1 + $0x30] sm:$0xff]  ;;  %v1004_v7 = vld [vmem:[%s1385_s1 + $0x28] sm:$0xff] }
   0x2   :  { %v1014_v1 = vld [vmem:[%s1385_s1 + $0x78] sm:$0xff]  ;;  %445 = vmatpush.bf16.msra.mxu0 %v1006_v0  ;;  %v1013_v4 = vld [vmem:[%s1385_s1 + $0x70] sm:$0xff]  ;;  %v1012_v8 = vld [vmem:[%s1385_s1 + $0x68] sm:$0xff] }
   0x3   :  { %v1022_v2 = vld [vmem:[%s1385_s1 + $0xb8] sm:$0xff]  ;;  %494 = vmatpush.bf16.msra.mxu1 %v1014_v1  ;;  %v1021_v5 = vld [vmem:[%s1385_s1 + $0xb0] sm:$0xff]  ;;  %v1020_v9 = vld [vmem:[%s1385_s1 + $0xa8] sm:$0xff] }
   0x4   :  { %543 = vmatpush.bf16.msra.mxu2 %v1022_v2  ;;  %v1025_v6 = vld [vmem:[%s1385_s1 + $0xd0] sm:$0xff]  ;;  %v1024_v10 = vld [vmem:[%s1385_s1 + $0xc8] sm:$0xff]  ;;  %v1003_v11 = vld [vmem:[%s1385_s1 + $0x20] sm:$0xff] }
   0x5   :  { %597 = vmatpush.bf16.msra.mxu3 %v1025_v6  ;;  %v1011_v12 = vld [vmem:[%s1385_s1 + $0x60] sm:$0xff]  ;;  %v968_v15 = vld [vmem:[%s1384_s0 + $0xc] sm:$0xf]  ;;  %v735_v16 = vld [vmem:[%s1384_s0 + $0x18] sm:$0xf0] }
   0x6   :  { %446 = vmatpush.bf16.msra.mxu0 %v1005_v3  ;;  %v1019_v13 = vld [vmem:[%s1385_s1 + $0xa0] sm:$0xff] }
   0x7   :  { %495 = vmatpush.bf16.msra.mxu1 %v1013_v4  ;;  %v1023_v14 = vld [vmem:[%s1385_s1 + $0xc0] sm:$0xff] }
   0x8   :  { %544 = vmatpush.bf16.msra.mxu2 %v1021_v5 }
   0x9   :  { %598 = vmatpush.bf16.msra.mxu3 %v1024_v10 }
   0xa   :  { %447 = vmatpush.bf16.msra.mxu0 %v1004_v7 }
   0xb   :  { %496 = vmatpush.bf16.msra.mxu1 %v1012_v8 }
   0xc   :  { %545 = vmatpush.bf16.msra.mxu2 %v1020_v9 }
   0xd   :  { %8 = vsyncpa [#allocation3], 0  ;;  %v1002_v17 = vld [vmem:[%s1385_s1 + $0x18] sm:$0xff]  ;;  %599 = vmatpush.bf16.msra.mxu3 %v1023_v14  ;;  %v738_v20 = vor.u32 %v968_v15, %v735_v16  ;;  %vm420_vm0 = vcmask 392192   ;;  %v1001_v21 = vld [vmem:[%s1385_s1 + $0x10] sm:$0xff]  ;;  %s1057_s5 = smov 128  }
   0xe   :  { %448 = vmatpush.bf16.msra.mxu0 %v1003_v11  ;;  %v1010_v18 = vld [vmem:[%s1385_s1 + $0x58] sm:$0xff]  ;;  %v1009_v22 = vld [vmem:[%s1385_s1 + $0x50] sm:$0xff]  ;;  %v1000_v24 = vld [vmem:[%s1385_s1 + $0x8] sm:$0xff]  ;;  %s1058_s6 = smov 8  }
   0xf   :  { %497 = vmatpush.bf16.msra.mxu1 %v1011_v12  ;;  %v1018_v19 = vld [vmem:[%s1385_s1 + $0x98] sm:$0xff]  ;;  %v1017_v23 = vld [vmem:[%s1385_s1 + $0x90] sm:$0xff]  ;;  %v1008_v25 = vld [vmem:[%s1385_s1 + $0x48] sm:$0xff] }
  0x10   :  { %546 = vmatpush.bf16.msra.mxu2 %v1019_v13  ;;  %959 = vmatmul.msk.bf16.vlgmr.msra.gmra.mxu3 %vm420_vm0, %v738_v20  ;;  %v1016_v26 = vld [vmem:[%s1385_s1 + $0x88] sm:$0xff]  ;;  %v999_v27 = vld [vmem:[%s1385_s1] sm:$0xff]  ;;  %v969_v30 = vld [vmem:[%s1384_s0 + $0xc] sm:$0xf0] }
  0x11   :  { %v1007_v28 = vld [vmem:[%s1385_s1 + $0x40] sm:$0xff]  ;;  %v727_v32 = vld [vmem:[%s1384_s0 + $0x10] sm:$0xf0]  ;;  %v733_v34 = vld [vmem:[%s1384_s0 + $0x8] sm:$0xf] }
  0x12   :  { %449 = vmatpush.bf16.msra.mxu0 %v1002_v17  ;;  %v725_v29 = vld [vmem:[%s1384_s0] sm:$0xf]  ;;  %v967_v31 = vld [vmem:[%s1384_s0 + $0x4] sm:$0xf]  ;;  %v970_v35 = vld [vmem:[%s1384_s0 + $0x14] sm:$0xf0] }
  0x13   :  { %498 = vmatpush.bf16.msra.mxu1 %v1010_v18  ;;  %v1015_v33 = vld [vmem:[%s1385_s1 + $0x80] sm:$0xff]  ;;  %v972_v36 = vld [vmem:[%s1384_s0 + $0x2c] sm:$0xf]  ;;  %v751_v37 = vld [vmem:[%s1384_s0 + $0x38] sm:$0xf0]  ;;  %v726_v38 = vor.u32 %v969_v30, %v725_v29  ;;  %v730_v39 = vor.u32 %v967_v31, %v727_v32  ;;  %v734_v40 = vor.u32 %v970_v35, %v733_v34  ;;  %s711_s1 = sshll.u32 %s1387_s3, 4  ;;  %s712_s1 = int_to_ptr.hbm [resolvable:$true] %s711_s1 }
  0x14   :  { %547 = vmatpush.bf16.msra.mxu2 %v1018_v19  ;;  %v754_v41 = vor.u32 %v972_v36, %v751_v37  ;;  %v741_v42 = vld [vmem:[%s1384_s0 + $0x20] sm:$0xf]  ;;  %v973_v43 = vld [vmem:[%s1384_s0 + $0x2c] sm:$0xf0]  ;;  %v971_v44 = vld [vmem:[%s1384_s0 + $0x24] sm:$0xf] }
  0x15   :  { %v743_v45 = vld [vmem:[%s1384_s0 + $0x30] sm:$0xf0]  ;;  %v749_v46 = vld [vmem:[%s1384_s0 + $0x28] sm:$0xf]  ;;  %v974_v47 = vld [vmem:[%s1384_s0 + $0x34] sm:$0xf0]  ;;  %v742_v50 = vor.u32 %v973_v43, %v741_v42 }
  0x16   :  { %450 = vmatpush.bf16.msra.mxu0 %v1001_v21  ;;  %v976_v48 = vld [vmem:[%s1384_s0 + $0x4c] sm:$0xf]  ;;  %v767_v49 = vld [vmem:[%s1384_s0 + $0x58] sm:$0xf0]  ;;  %v746_v51 = vor.u32 %v971_v44, %v743_v45  ;;  %v750_v52 = vor.u32 %v974_v47, %v749_v46  ;;  %v757_v54 = vld [vmem:[%s1384_s0 + $0x40] sm:$0xf] }
  0x17   :  { %499 = vmatpush.bf16.msra.mxu1 %v1009_v22  ;;  %v770_v53 = vor.u32 %v976_v48, %v767_v49  ;;  %v977_v55 = vld [vmem:[%s1384_s0 + $0x4c] sm:$0xf0]  ;;  %v975_v56 = vld [vmem:[%s1384_s0 + $0x44] sm:$0xf]  ;;  %v759_v57 = vld [vmem:[%s1384_s0 + $0x50] sm:$0xf0] }
  0x18   :  { %548 = vmatpush.bf16.msra.mxu2 %v1017_v23  ;;  %v765_v58 = vld [vmem:[%s1384_s0 + $0x48] sm:$0xf]  ;;  %v978_v59 = vld [vmem:[%s1384_s0 + $0x54] sm:$0xf0]  ;;  %v980_v60 = vld [vmem:[%s1384_s0 + $0x6c] sm:$0xf]  ;;  %v758_v62 = vor.u32 %v977_v55, %v757_v54  ;;  %v762_v63 = vor.u32 %v975_v56, %v759_v57 }
  0x19   :  { %v783_v61 = vld [vmem:[%s1384_s0 + $0x78] sm:$0xf0]  ;;  %v766_v0 = vor.u32 %v978_v59, %v765_v58  ;;  %v773_v2 = vld [vmem:[%s1384_s0 + $0x60] sm:$0xf]  ;;  %v981_v3 = vld [vmem:[%s1384_s0 + $0x6c] sm:$0xf0] }
  0x1a   :  { %451 = vmatpush.bf16.msra.mxu0 %v1000_v24  ;;  %v786_v1 = vor.u32 %v980_v60, %v783_v61  ;;  %v979_v4 = vld [vmem:[%s1384_s0 + $0x64] sm:$0xf]  ;;  %v775_v5 = vld [vmem:[%s1384_s0 + $0x70] sm:$0xf0]  ;;  %v781_v6 = vld [vmem:[%s1384_s0 + $0x68] sm:$0xf]  ;;  %v774_v10 = vor.u32 %v981_v3, %v773_v2 }
  0x1b   :  { %500 = vmatpush.bf16.msra.mxu1 %v1008_v25  ;;  %v982_v7 = vld [vmem:[%s1384_s0 + $0x74] sm:$0xf0]  ;;  %v984_v8 = vld [vmem:[%s1384_s0 + $0x8c] sm:$0xf]  ;;  %v799_v9 = vld [vmem:[%s1384_s0 + $0x98] sm:$0xf0]  ;;  %v778_v11 = vor.u32 %v979_v4, %v775_v5 }
  0x1c   :  { %549 = vmatpush.bf16.msra.mxu2 %v1016_v26  ;;  %v782_v12 = vor.u32 %v982_v7, %v781_v6  ;;  %v802_v13 = vor.u32 %v984_v8, %v799_v9  ;;  %v789_v14 = vld [vmem:[%s1384_s0 + $0x80] sm:$0xf]  ;;  %v985_v15 = vld [vmem:[%s1384_s0 + $0x8c] sm:$0xf0]  ;;  %v983_v16 = vld [vmem:[%s1384_s0 + $0x84] sm:$0xf] }
  0x1d   :  { %v791_v17 = vld [vmem:[%s1384_s0 + $0x90] sm:$0xf0]  ;;  %v797_v18 = vld [vmem:[%s1384_s0 + $0x88] sm:$0xf]  ;;  %v986_v19 = vld [vmem:[%s1384_s0 + $0x94] sm:$0xf0]  ;;  %v790_v22 = vor.u32 %v985_v15, %v789_v14 }
  0x1e   :  { %452 = vmatpush.bf16.msra.mxu0 %v999_v27  ;;  %v988_v20 = vld [vmem:[%s1384_s0 + $0xac] sm:$0xf]  ;;  %v815_v21 = vld [vmem:[%s1384_s0 + $0xb8] sm:$0xf0]  ;;  %v794_v23 = vor.u32 %v983_v16, %v791_v17  ;;  %v798_v24 = vor.u32 %v986_v19, %v797_v18  ;;  %v805_v26 = vld [vmem:[%s1384_s0 + $0xa0] sm:$0xf] }
  0x1f   :  { %501 = vmatpush.bf16.msra.mxu1 %v1007_v28  ;;  %v818_v25 = vor.u32 %v988_v20, %v815_v21  ;;  %v989_v27 = vld [vmem:[%s1384_s0 + $0xac] sm:$0xf0]  ;;  %v987_v28 = vld [vmem:[%s1384_s0 + $0xa4] sm:$0xf]  ;;  %v807_v29 = vld [vmem:[%s1384_s0 + $0xb0] sm:$0xf0] }
  0x20   :  { %550 = vmatpush.bf16.msra.mxu2 %v1015_v33  ;;  %960 = vmatmul.msk.bf16.gmra.mxu3 %vm420_vm0, %v754_v41  ;;  %v813_v30 = vld [vmem:[%s1384_s0 + $0xa8] sm:$0xf]  ;;  %v990_v31 = vld [vmem:[%s1384_s0 + $0xb4] sm:$0xf0]  ;;  %v992_v32 = vld [vmem:[%s1384_s0 + $0xcc] sm:$0xf]  ;;  %v806_v34 = vor.u32 %v989_v27, %v805_v26  ;;  %v810_v35 = vor.u32 %v987_v28, %v807_v29 }
  0x21   :  { %453 = vmatmul.bf16.vlgmr.msra.gmra.mxu0 %v726_v38  ;;  %v831_v33 = vld [vmem:[%s1384_s0 + $0xd8] sm:$0xf0]  ;;  %v814_v36 = vor.u32 %v990_v31, %v813_v30  ;;  %v821_v38 = vld [vmem:[%s1384_s0 + $0xc0] sm:$0xf]  ;;  %v823_v41 = vld [vmem:[%s1384_s0 + $0xd0] sm:$0xf0] }
  0x22   :  { %502 = vmatmul.bf16.vlgmr.msra.gmra.mxu1 %v730_v39  ;;  %v834_v37 = vor.u32 %v992_v32, %v831_v33  ;;  %v993_v39 = vld [vmem:[%s1384_s0 + $0xcc] sm:$0xf0]  ;;  %v829_v42 = vld [vmem:[%s1384_s0 + $0xc8] sm:$0xf]  ;;  %v994_v43 = vld [vmem:[%s1384_s0 + $0xd4] sm:$0xf0] }
  0x23   :  { %551 = vmatmul.bf16.vlgmr.msra.gmra.mxu2 %v734_v40  ;;  %v991_v40 = vld [vmem:[%s1384_s0 + $0xc4] sm:$0xf]  ;;  %v996_v44 = vld [vmem:[%s1384_s0 + $0xec] sm:$0xf]  ;;  %v847_v45 = vld [vmem:[%s1384_s0 + $0xf8] sm:$0xf0]  ;;  %v822_v46 = vor.u32 %v993_v39, %v821_v38  ;;  %v830_v48 = vor.u32 %v994_v43, %v829_v42 }
  0x24   :  { %v826_v47 = vor.u32 %v991_v40, %v823_v41  ;;  %v850_v49 = vor.u32 %v996_v44, %v847_v45  ;;  %v845_v54 = vld [vmem:[%s1384_s0 + $0xe8] sm:$0xf]  ;;  %v998_v55 = vld [vmem:[%s1384_s0 + $0xf4] sm:$0xf0]  ;;  %v1363_v60 = vld [vmem:[%s1386_s2] ss:$0 sm:$0xff] }
  0x25   :  { %v846_v58 = vor.u32 %v998_v55, %v845_v54 }
  0x30   :  { %961 = vmatmul.msk.bf16.gmra.mxu3 %vm420_vm0, %v770_v53  ;;  %v839_v53 = vld [vmem:[%s1384_s0 + $0xf0] sm:$0xf0] }
  0x31   :  { %458 = vmatmul.bf16.gmra.mxu0 %v742_v50  ;;  %v837_v50 = vld [vmem:[%s1384_s0 + $0xe0] sm:$0xf] }
  0x32   :  { %507 = vmatmul.bf16.gmra.mxu1 %v746_v51  ;;  %v997_v51 = vld [vmem:[%s1384_s0 + $0xec] sm:$0xf0] }
  0x33   :  { %556 = vmatmul.bf16.gmra.mxu2 %v750_v52  ;;  %v995_v52 = vld [vmem:[%s1384_s0 + $0xe4] sm:$0xf]  ;;  %v838_v56 = vor.u32 %v997_v51, %v837_v50  ;;  %s1056_s0 = smov [#allocation2]  }
  0x34   :  { %v842_v57 = vor.u32 %v995_v52, %v839_v53  ;;  %s709_s2 = sshll.u32 %s1056_s0, 4  ;;  %s710_s2 = int_to_ptr.vmem [resolvable:$true] %s709_s2 }
  0x40   :  { %962 = vmatmul.msk.bf16.gmra.mxu3 %vm420_vm0, %v786_v1 }
  0x41   :  { %463 = vmatmul.bf16.gmra.mxu0 %v758_v62 }
  0x42   :  { %512 = vmatmul.bf16.gmra.mxu1 %v762_v63 }
  0x43   :  { %561 = vmatmul.bf16.gmra.mxu2 %v766_v0 }
  0x50   :  { %963 = vmatmul.msk.bf16.gmra.mxu3 %vm420_vm0, %v802_v13 }
  0x51   :  { %468 = vmatmul.bf16.gmra.mxu0 %v774_v10 }
  0x52   :  { %517 = vmatmul.bf16.gmra.mxu1 %v778_v11 }
  0x53   :  { %566 = vmatmul.bf16.gmra.mxu2 %v782_v12 }
  0x60   :  { %964 = vmatmul.msk.bf16.gmra.mxu3 %vm420_vm0, %v818_v25 }
  0x61   :  { %473 = vmatmul.bf16.gmra.mxu0 %v790_v22 }
  0x62   :  { %522 = vmatmul.bf16.gmra.mxu1 %v794_v23 }
  0x63   :  { %571 = vmatmul.bf16.gmra.mxu2 %v798_v24 }
  0x70   :  { %965 = vmatmul.msk.bf16.gmra.mxu3 %vm420_vm0, %v834_v37 }
  0x71   :  { %478 = vmatmul.bf16.gmra.mxu0 %v806_v34 }
  0x72   :  { %527 = vmatmul.bf16.gmra.mxu1 %v810_v35 }
  0x73   :  { %576 = vmatmul.bf16.gmra.mxu2 %v814_v36 }
  0x80   :  { %966 = vmatmul.msk.bf16.gmra.mxu3 %vm420_vm0, %v850_v49 }
  0x81   :  { %483 = vmatmul.bf16.gmra.mxu0 %v822_v46 }
  0x82   :  { %532 = vmatmul.bf16.gmra.mxu1 %v826_v47 }
  0x83   :  { %581 = vmatmul.bf16.gmra.mxu2 %v830_v48 }
  0x91   :  { %488 = vmatmul.bf16.gmra.mxu0 %v838_v56 }
  0x92   :  { %537 = vmatmul.bf16.gmra.mxu1 %v842_v57 }
  0x93   :  { %586 = vmatmul.bf16.gmra.mxu2 %v846_v58  ;;  %v601_v59 = vpop.f32.mrf.mxu3 }
  0x9b   :  { %v603_v0 = vpop.f32.mrf.mxu3 }
  0x9e   :  { %v454_v61 = vpop.f32.mrf.mxu0 }
  0x9f   :  { %v503_v62 = vpop.f32.mrf.mxu1  ;;  %v455_v63 = vadd.f32 %v1363_v60, %v454_v61 }
  0xa1   :  { %v504_v1 = vadd.f32 %v503_v62, %v455_v63 }
  0xa3   :  { %v606_v6 = vpop.f32.mrf.mxu3 }
  0xa6   :  { %v552_v2 = vpop.f32.mrf.mxu2  ;;  %v456_v4 = vpop.f32.mrf.mxu0 }
  0xa7   :  { %v553_v3 = vadd.f32 %v552_v2, %v504_v1  ;;  %v505_v5 = vpop.f32.mrf.mxu1  ;;  %v457_v8 = vadd.f32 %v1363_v60, %v456_v4 }
  0xa9   :  { %v602_v7 = vadd.f32 %v601_v59, %v553_v3  ;;  %v506_v11 = vadd.f32 %v505_v5, %v457_v8 }
  0xab   :  { %vm641_vm1 = vcmp.ge.f32.partialorder %v602_v7, 0.0  ;;  %v657_v9 = vmul.f32 0.01, %v602_v7  ;;  %v608_v17 = vpop.f32.mrf.mxu3 }
  0xad   :  { %v673_v10 = vsel %vm641_vm1, %v602_v7, %v657_v9 }
  0xae   :  { %689 = vst [vmem:[#allocation2] sm:$0xff] %v673_v10  ;;  %v554_v12 = vpop.f32.mrf.mxu2  ;;  %v459_v14 = vpop.f32.mrf.mxu0 }
  0xaf   :  { %v555_v13 = vadd.f32 %v554_v12, %v506_v11  ;;  %v508_v15 = vpop.f32.mrf.mxu1  ;;  %v460_v16 = vadd.f32 %v1363_v60, %v459_v14 }
  0xb1   :  { %v604_v18 = vadd.f32 %v603_v0, %v555_v13  ;;  %v509_v20 = vadd.f32 %v508_v15, %v460_v16 }
  0xb3   :  { %vm642_vm2 = vcmp.ge.f32.partialorder %v604_v18, 0.0  ;;  %v658_v19 = vmul.f32 0.01, %v604_v18  ;;  %v611_v26 = vpop.f32.mrf.mxu3 }
  0xb5   :  { %v674_v21 = vsel %vm642_vm2, %v604_v18, %v658_v19 }
  0xb6   :  { %690 = vst [vmem:[#allocation2 + $0x8] sm:$0xff] %v674_v21  ;;  %v557_v22 = vpop.f32.mrf.mxu2  ;;  %v461_v24 = vpop.f32.mrf.mxu0 }
  0xb7   :  { %v558_v23 = vadd.f32 %v557_v22, %v509_v20  ;;  %v510_v25 = vpop.f32.mrf.mxu1  ;;  %v462_v28 = vadd.f32 %v1363_v60, %v461_v24 }
  0xb9   :  { %v607_v27 = vadd.f32 %v606_v6, %v558_v23  ;;  %v511_v31 = vadd.f32 %v510_v25, %v462_v28 }
  0xbb   :  { %vm643_vm3 = vcmp.ge.f32.partialorder %v607_v27, 0.0  ;;  %v659_v29 = vmul.f32 0.01, %v607_v27  ;;  %v613_v37 = vpop.f32.mrf.mxu3 }
  0xbd   :  { %v675_v30 = vsel %vm643_vm3, %v607_v27, %v659_v29 }
  0xbe   :  { %691 = vst [vmem:[#allocation2 + $0x10] sm:$0xff] %v675_v30  ;;  %v559_v32 = vpop.f32.mrf.mxu2  ;;  %v464_v34 = vpop.f32.mrf.mxu0 }
  0xbf   :  { %v560_v33 = vadd.f32 %v559_v32, %v511_v31  ;;  %v513_v35 = vpop.f32.mrf.mxu1  ;;  %v465_v36 = vadd.f32 %v1363_v60, %v464_v34 }
  0xc1   :  { %v609_v38 = vadd.f32 %v608_v17, %v560_v33  ;;  %v514_v40 = vadd.f32 %v513_v35, %v465_v36 }
  0xc3   :  { %vm644_vm4 = vcmp.ge.f32.partialorder %v609_v38, 0.0  ;;  %v660_v39 = vmul.f32 0.01, %v609_v38  ;;  %v616_v46 = vpop.f32.mrf.mxu3 }
  0xc5   :  { %v676_v41 = vsel %vm644_vm4, %v609_v38, %v660_v39 }
  0xc6   :  { %692 = vst [vmem:[#allocation2 + $0x18] sm:$0xff] %v676_v41  ;;  %v562_v42 = vpop.f32.mrf.mxu2  ;;  %v466_v44 = vpop.f32.mrf.mxu0 }
  0xc7   :  { %v563_v43 = vadd.f32 %v562_v42, %v514_v40  ;;  %v515_v45 = vpop.f32.mrf.mxu1  ;;  %v467_v48 = vadd.f32 %v1363_v60, %v466_v44 }
  0xc9   :  { %v612_v47 = vadd.f32 %v611_v26, %v563_v43  ;;  %v516_v51 = vadd.f32 %v515_v45, %v467_v48 }
  0xcb   :  { %vm645_vm5 = vcmp.ge.f32.partialorder %v612_v47, 0.0  ;;  %v661_v49 = vmul.f32 0.01, %v612_v47  ;;  %v618_v57 = vpop.f32.mrf.mxu3 }
  0xcd   :  { %v677_v50 = vsel %vm645_vm5, %v612_v47, %v661_v49 }
  0xce   :  { %693 = vst [vmem:[#allocation2 + $0x20] sm:$0xff] %v677_v50  ;;  %v564_v52 = vpop.f32.mrf.mxu2  ;;  %v469_v54 = vpop.f32.mrf.mxu0 }
  0xcf   :  { %v565_v53 = vadd.f32 %v564_v52, %v516_v51  ;;  %v518_v55 = vpop.f32.mrf.mxu1  ;;  %v470_v56 = vadd.f32 %v1363_v60, %v469_v54 }
  0xd1   :  { %v614_v58 = vadd.f32 %v613_v37, %v565_v53  ;;  %v519_v61 = vadd.f32 %v518_v55, %v470_v56 }
  0xd3   :  { %vm646_vm6 = vcmp.ge.f32.partialorder %v614_v58, 0.0  ;;  %v662_v59 = vmul.f32 0.01, %v614_v58  ;;  %v621_v5 = vpop.f32.mrf.mxu3 }
  0xd5   :  { %v678_v62 = vsel %vm646_vm6, %v614_v58, %v662_v59 }
  0xd6   :  { %694 = vst [vmem:[#allocation2 + $0x28] sm:$0xff] %v678_v62  ;;  %v567_v63 = vpop.f32.mrf.mxu2  ;;  %v471_v1 = vpop.f32.mrf.mxu0 }
  0xd7   :  { %v568_v0 = vadd.f32 %v567_v63, %v519_v61  ;;  %v520_v2 = vpop.f32.mrf.mxu1  ;;  %v472_v4 = vadd.f32 %v1363_v60, %v471_v1 }
  0xd9   :  { %v617_v3 = vadd.f32 %v616_v46, %v568_v0  ;;  %v521_v8 = vadd.f32 %v520_v2, %v472_v4 }
  0xdb   :  { %vm647_vm7 = vcmp.ge.f32.partialorder %v617_v3, 0.0  ;;  %v663_v6 = vmul.f32 0.01, %v617_v3  ;;  %v623_v17 = vpop.f32.mrf.mxu3 }
  0xdd   :  { %v679_v7 = vsel %vm647_vm7, %v617_v3, %v663_v6 }
  0xde   :  { %695 = vst [vmem:[#allocation2 + $0x30] sm:$0xff] %v679_v7  ;;  %v569_v9 = vpop.f32.mrf.mxu2  ;;  %v474_v11 = vpop.f32.mrf.mxu0 }
  0xdf   :  { %v570_v10 = vadd.f32 %v569_v9, %v521_v8  ;;  %v523_v12 = vpop.f32.mrf.mxu1  ;;  %v475_v13 = vadd.f32 %v1363_v60, %v474_v11 }
  0xe1   :  { %v619_v14 = vadd.f32 %v618_v57, %v570_v10  ;;  %v524_v16 = vadd.f32 %v523_v12, %v475_v13 }
  0xe3   :  { %vm648_vm8 = vcmp.ge.f32.partialorder %v619_v14, 0.0  ;;  %v664_v15 = vmul.f32 0.01, %v619_v14  ;;  %v626_v29 = vpop.f32.mrf.mxu3 }
  0xe5   :  { %v680_v18 = vsel %vm648_vm8, %v619_v14, %v664_v15 }
  0xe6   :  { %696 = vst [vmem:[#allocation2 + $0x38] sm:$0xff] %v680_v18  ;;  %v572_v19 = vpop.f32.mrf.mxu2  ;;  %v476_v21 = vpop.f32.mrf.mxu0 }
  0xe7   :  { %v573_v20 = vadd.f32 %v572_v19, %v524_v16  ;;  %v525_v22 = vpop.f32.mrf.mxu1  ;;  %v477_v24 = vadd.f32 %v1363_v60, %v476_v21 }
  0xe9   :  { %v622_v23 = vadd.f32 %v621_v5, %v573_v20  ;;  %v526_v27 = vadd.f32 %v525_v22, %v477_v24 }
  0xeb   :  { %vm649_vm9 = vcmp.ge.f32.partialorder %v622_v23, 0.0  ;;  %v665_v25 = vmul.f32 0.01, %v622_v23  ;;  %v628_v42 = vpop.f32.mrf.mxu3 }
  0xed   :  { %v681_v26 = vsel %vm649_vm9, %v622_v23, %v665_v25 }
  0xee   :  { %697 = vst [vmem:[#allocation2 + $0x40] sm:$0xff] %v681_v26  ;;  %v574_v28 = vpop.f32.mrf.mxu2  ;;  %v479_v31 = vpop.f32.mrf.mxu0 }
  0xef   :  { %v575_v30 = vadd.f32 %v574_v28, %v526_v27  ;;  %v528_v32 = vpop.f32.mrf.mxu1  ;;  %v480_v33 = vadd.f32 %v1363_v60, %v479_v31 }
  0xf1   :  { %v624_v34 = vadd.f32 %v623_v17, %v575_v30  ;;  %v529_v36 = vadd.f32 %v528_v32, %v480_v33 }
  0xf3   :  { %vm650_vm10 = vcmp.ge.f32.partialorder %v624_v34, 0.0  ;;  %v666_v35 = vmul.f32 0.01, %v624_v34  ;;  %v631_v54 = vpop.f32.mrf.mxu3 }
  0xf5   :  { %v682_v37 = vsel %vm650_vm10, %v624_v34, %v666_v35 }
  0xf6   :  { %698 = vst [vmem:[#allocation2 + $0x48] sm:$0xff] %v682_v37  ;;  %v577_v38 = vpop.f32.mrf.mxu2  ;;  %v481_v40 = vpop.f32.mrf.mxu0 }
  0xf7   :  { %v578_v39 = vadd.f32 %v577_v38, %v529_v36  ;;  %v530_v41 = vpop.f32.mrf.mxu1  ;;  %v482_v44 = vadd.f32 %v1363_v60, %v481_v40 }
  0xf9   :  { %v627_v43 = vadd.f32 %v626_v29, %v578_v39  ;;  %v531_v47 = vadd.f32 %v530_v41, %v482_v44 }
  0xfb   :  { %vm651_vm11 = vcmp.ge.f32.partialorder %v627_v43, 0.0  ;;  %v667_v45 = vmul.f32 0.01, %v627_v43  ;;  %v633_v2 = vpop.f32.mrf.mxu3 }
  0xfd   :  { %v683_v46 = vsel %vm651_vm11, %v627_v43, %v667_v45 }
  0xfe   :  { %699 = vst [vmem:[#allocation2 + $0x50] sm:$0xff] %v683_v46  ;;  %v579_v48 = vpop.f32.mrf.mxu2  ;;  %v484_v50 = vpop.f32.mrf.mxu0 }
  0xff   :  { %v580_v49 = vadd.f32 %v579_v48, %v531_v47  ;;  %v533_v51 = vpop.f32.mrf.mxu1  ;;  %v485_v52 = vadd.f32 %v1363_v60, %v484_v50 }
 0x101   :  { %v629_v53 = vadd.f32 %v628_v42, %v580_v49  ;;  %v534_v56 = vadd.f32 %v533_v51, %v485_v52 }
 0x103   :  { %vm652_vm12 = vcmp.ge.f32.partialorder %v629_v53, 0.0  ;;  %v668_v55 = vmul.f32 0.01, %v629_v53  ;;  %v636_v14 = vpop.f32.mrf.mxu3 }
 0x105   :  { %v684_v57 = vsel %vm652_vm12, %v629_v53, %v668_v55 }
 0x106   :  { %700 = vst [vmem:[#allocation2 + $0x58] sm:$0xff] %v684_v57  ;;  %v582_v58 = vpop.f32.mrf.mxu2  ;;  %v486_v61 = vpop.f32.mrf.mxu0 }
 0x107   :  { %v583_v59 = vadd.f32 %v582_v58, %v534_v56  ;;  %v535_v62 = vpop.f32.mrf.mxu1  ;;  %v487_v0 = vadd.f32 %v1363_v60, %v486_v61 }
 0x109   :  { %v632_v63 = vadd.f32 %v631_v54, %v583_v59  ;;  %v536_v4 = vadd.f32 %v535_v62, %v487_v0 }
 0x10b   :  { %vm653_vm13 = vcmp.ge.f32.partialorder %v632_v63, 0.0  ;;  %v669_v1 = vmul.f32 0.01, %v632_v63  ;;  %v638_v26 = vpop.f32.mrf.mxu3 }
 0x10d   :  { %v685_v3 = vsel %vm653_vm13, %v632_v63, %v669_v1 }
 0x10e   :  { %701 = vst [vmem:[#allocation2 + $0x60] sm:$0xff] %v685_v3  ;;  %v584_v5 = vpop.f32.mrf.mxu2  ;;  %v489_v7 = vpop.f32.mrf.mxu0 }
 0x10f   :  { %v585_v6 = vadd.f32 %v584_v5, %v536_v4  ;;  %v490_v8 = vadd.f32 %v1363_v60, %v489_v7  ;;  %v538_v10 = vpop.f32.mrf.mxu1 }
 0x111   :  { %v634_v9 = vadd.f32 %v633_v2, %v585_v6  ;;  %v539_v12 = vadd.f32 %v538_v10, %v490_v8 }
 0x113   :  { %vm654_vm14 = vcmp.ge.f32.partialorder %v634_v9, 0.0  ;;  %v670_v11 = vmul.f32 0.01, %v634_v9 }
 0x115   :  { %v686_v13 = vsel %vm654_vm14, %v634_v9, %v670_v11 }
 0x116   :  { %702 = vst [vmem:[#allocation2 + $0x68] sm:$0xff] %v686_v13  ;;  %v587_v15 = vpop.f32.mrf.mxu2  ;;  %v491_v17 = vpop.f32.mrf.mxu0 }
 0x117   :  { %v588_v16 = vadd.f32 %v587_v15, %v539_v12  ;;  %v492_v19 = vadd.f32 %v1363_v60, %v491_v17  ;;  %v540_v21 = vpop.f32.mrf.mxu1 }
 0x119   :  { %v637_v18 = vadd.f32 %v636_v14, %v588_v16  ;;  %v541_v23 = vadd.f32 %v540_v21, %v492_v19 }
 0x11b   :  { %vm655_vm15 = vcmp.ge.f32.partialorder %v637_v18, 0.0  ;;  %v671_v20 = vmul.f32 0.01, %v637_v18 }
 0x11d   :  { %v687_v22 = vsel %vm655_vm15, %v637_v18, %v671_v20 }
 0x11e   :  { %703 = vst [vmem:[#allocation2 + $0x70] sm:$0xff] %v687_v22  ;;  %v589_v24 = vpop.f32.mrf.mxu2 }
 0x11f   :  { %v590_v25 = vadd.f32 %v589_v24, %v541_v23 }
 0x121   :  { %v639_v27 = vadd.f32 %v638_v26, %v590_v25 }
 0x123   :  { %vm656_vm0 = vcmp.ge.f32.partialorder %v639_v27, 0.0  ;;  %v672_v28 = vmul.f32 0.01, %v639_v27 }
 0x125   :  { %v688_v60 = vsel %vm656_vm0, %v639_v27, %v672_v28 }
 0x126   :  { %704 = vst [vmem:[#allocation2 + $0x78] sm:$0xff] %v688_v60 }
 0x127   :  { %717 = dma.vmem_to_hbm [thread:$0]  %s710_s2, 2048, %s712_s1, [#allocation3], %s1057_s5, %s1057_s5, %s1058_s6  }
 0x128   :  { %1054 = dma.done.wait [#allocation3], 2048  }
 0x129   :  { %1055 = vsyncadd [#allocation3], 4294965248 }
 0x12a   :  { %722 = vsyncpa [#allocation3], 1 }

</bundles_post_ra>
